<compile_context>
chip_gen: v7x
topology: tpu7x:2x2x1
jax: 0.10.0
libtpu: 0.0.40
codegen_flags: <defaults>
</compile_context>

<pallas_src>
import functools

import jax
import jax.numpy as jnp
from jax import lax
from jax.experimental import pallas as pl
from jax.experimental.pallas import tpu as pltpu

DIM_IN = 768          # dim_in of Projector / fc
NUM_CLASSES = 10      # num_classes default
LANE_PAD = 128        # lane-dense output width
BN_EPS = 1e-5         # nn.BatchNorm1d default eps
BLOCK_M = 512         # batch rows per block (85%+ of HBM roofline, v5e-safe)
FUSE_MAX_ROWS = 8192  # fuse both passes when padded batch's bf16 h fits VMEM


def _round_up(x, m):
    return ((x + m - 1) // m) * m


# ----------------------------- fused single-call -----------------------------
def fused_kernel(inv_b, x_ref, w1_ref, gamma_ref, beta_ref, w2_ref, b2_ref,
                 out_ref, h_vmem, stats_vmem):
    """grid=(2, nb): pass 0 = Linear + stat accumulation into VMEM,
    pass 1 = BN (full-batch stats) + ReLU + fc, reading h from VMEM scratch."""
    p = pl.program_id(0)   # pass
    i = pl.program_id(1)   # batch block

    @pl.when(p == 0)
    def _():
        @pl.when(i == 0)
        def _():
            stats_vmem[...] = jnp.zeros_like(stats_vmem)
        h = jnp.dot(x_ref[...], w1_ref[...],
                    preferred_element_type=jnp.float32)      # [bm, D] f32
        h_vmem[i] = h.astype(jnp.bfloat16)                   # VMEM-resident h
        stats_vmem[0:1, :] += jnp.sum(h, axis=0, keepdims=True)
        stats_vmem[1:2, :] += jnp.sum(h * h, axis=0, keepdims=True)

    @pl.when(p == 1)
    def _():
        mean = stats_vmem[0:1, :] * inv_b                     # [1, D]
        var = jnp.maximum(stats_vmem[1:2, :] * inv_b - mean * mean, 0.0)
        scale = gamma_ref[...] * lax.rsqrt(var + BN_EPS)
        shift = beta_ref[...] - mean * scale
        h = h_vmem[i].astype(jnp.float32)
        hn = jnp.maximum(h * scale + shift, 0.0)              # BN + ReLU, f32
        out = jnp.dot(hn.astype(jnp.bfloat16), w2_ref[...],
                      preferred_element_type=jnp.float32)     # [bm, 128]
        out_ref[...] = out + b2_ref[...]


# --------------------- fallback pass 1: Linear + stats -----------------------
def lin_stats_kernel(x_ref, w1_ref, h_ref, stats_ref):
    """h = x @ W1 (bf16 operands, f32 accumulate), stored bf16; per-block sums."""
    h = jnp.dot(x_ref[...], w1_ref[...], preferred_element_type=jnp.float32)
    h_ref[...] = h.astype(jnp.bfloat16)                       # halve h HBM bytes
    stats_ref[0:1, :] = jnp.sum(h, axis=0, keepdims=True)     # no concat
    stats_ref[1:2, :] = jnp.sum(h * h, axis=0, keepdims=True)


# ------------------- fallback pass 2: BN + ReLU + fc -------------------------
def bn_relu_fc_kernel(h_ref, scale_ref, shift_ref, w2_ref, b2_ref, out_ref):
    hn = jnp.maximum(h_ref[...].astype(jnp.float32) * scale_ref[...]
                     + shift_ref[...], 0.0)
    out = jnp.dot(hn.astype(jnp.bfloat16), w2_ref[...],
                  preferred_element_type=jnp.float32)
    out_ref[...] = out + b2_ref[...]


def supce_forward(feats, params, *, block_m=BLOCK_M, force_two_pass=False):
    """feats: [B, DIM_IN] float32 backbone features -> [B, NUM_CLASSES] float32."""
    w1, b1, gamma, beta, w2, b2 = params
    del b1  # per-feature bias is a no-op under training-mode BatchNorm
    B, D = feats.shape
    assert D == DIM_IN

    # Batch block: multiple of 16 (bf16 sublane packing), capped at block_m.
    bm = min(block_m, _round_up(B, 16))
    bm = _round_up(bm, 16)
    b_pad = _round_up(B, bm)
    nb = b_pad // bm

    # bf16 matmul operands (f32 accumulation inside the kernels).
    x = feats.astype(jnp.bfloat16)
    if b_pad != B:
        # Zero rows give exactly-zero h (no b1), so batch stats are unaffected.
        x = jnp.pad(x, ((0, b_pad - B), (0, 0)))
    w1_bf = w1.astype(jnp.bfloat16)

    # Lane-pad the classifier to 128 output lanes (zeros beyond NUM_CLASSES).
    c = w2.shape[1]
    c_pad = _round_up(c, LANE_PAD)
    w2_p = jnp.pad(w2, ((0, 0), (0, c_pad - c))).astype(jnp.bfloat16)
    b2_p = jnp.pad(b2, ((0, 0), (0, c_pad - c)))

    inv_b = 1.0 / float(B)
    vmem_limit = 32 * 1024 * 1024   # worst-case fused need ~18 MiB; v7x-safe

    if (not force_two_pass) and b_pad <= FUSE_MAX_ROWS:
        # ---- fused: no h HBM round trip, no host-side stats reduce ----
        out_pad = pl.pallas_call(
            functools.partial(fused_kernel, inv_b),
            out_shape=jax.ShapeDtypeStruct((b_pad, c_pad), jnp.float32),
            grid=(2, nb),
            in_specs=[
                # x only needed in pass 0; collapse to block 0 during pass 1.
                pl.BlockSpec((bm, D), lambda p, i: (i * (1 - p), 0)),
                pl.BlockSpec((D, D), lambda p, i: (0, 0)),        # W1 resident
                pl.BlockSpec((1, D), lambda p, i: (0, 0)),        # gamma
                pl.BlockSpec((1, D), lambda p, i: (0, 0)),        # beta
                pl.BlockSpec((D, c_pad), lambda p, i: (0, 0)),    # W2 (padded)
                pl.BlockSpec((1, c_pad), lambda p, i: (0, 0)),    # b2 (padded)
            ],
            # Output only written in pass 1; pin to block 0 during pass 0 so no
            # uninitialized writebacks happen.
            out_specs=pl.BlockSpec((bm, c_pad), lambda p, i: (i * p, 0)),
            scratch_shapes=[
                pltpu.VMEM((nb, bm, D), jnp.bfloat16),   # persistent h
                pltpu.VMEM((2, D), jnp.float32),         # sum / sum_sq
            ],
            compiler_params=pltpu.CompilerParams(
                # stats couple all batch blocks -> both axes must stay serial
                dimension_semantics=("arbitrary", "arbitrary"),
                vmem_limit_bytes=vmem_limit),
        )(x, w1_bf, gamma, beta, w2_p, b2_p)
        return out_pad[:B, :c]

    # ---------------- fallback: two pallas_calls (large batches) -------------
    cparams = pltpu.CompilerParams(
        dimension_semantics=("parallel",),      # batch blocks independent
        vmem_limit_bytes=vmem_limit)

    h, partial_stats = pl.pallas_call(
        lin_stats_kernel,
        out_shape=(jax.ShapeDtypeStruct((b_pad, D), jnp.bfloat16),
                   jax.ShapeDtypeStruct((nb, 2, D), jnp.float32)),
        grid=(nb,),
        in_specs=[
            pl.BlockSpec((bm, D), lambda i: (i, 0)),          # x tile
            pl.BlockSpec((D, D), lambda i: (0, 0)),           # W1 resident
        ],
        out_specs=(
            pl.BlockSpec((bm, D), lambda i: (i, 0)),          # h tile (bf16)
            pl.BlockSpec((None, 2, D), lambda i: (i, 0, 0)),  # per-block stats
        ),
        compiler_params=cparams,
    )(x, w1_bf)

    # Tiny cross-block reduction + BN scale/shift precompute in jnp glue.
    stats = jnp.sum(partial_stats, axis=0)                    # [2, D]
    mean = stats[0:1, :] * inv_b
    var = jnp.maximum(stats[1:2, :] * inv_b - mean * mean, 0.0)
    scale = gamma * lax.rsqrt(var + BN_EPS)
    shift = beta - mean * scale

    out_pad = pl.pallas_call(
        bn_relu_fc_kernel,
        out_shape=jax.ShapeDtypeStruct((b_pad, c_pad), jnp.float32),
        grid=(nb,),
        in_specs=[
            pl.BlockSpec((bm, D), lambda i: (i, 0)),          # h tile (bf16)
            pl.BlockSpec((1, D), lambda i: (0, 0)),           # scale
            pl.BlockSpec((1, D), lambda i: (0, 0)),           # shift
            pl.BlockSpec((D, c_pad), lambda i: (0, 0)),       # W2 (padded)
            pl.BlockSpec((1, c_pad), lambda i: (0, 0)),       # b2 (padded)
        ],
        out_specs=pl.BlockSpec((bm, c_pad), lambda i: (i, 0)),
        compiler_params=cparams,
    )(h, scale, shift, w2_p, b2_p)

    return out_pad[:B, :c]


def init_params(key):
    """Deterministic synthetic init matching PyTorch default Linear/BN init."""
    k1, k2, k3, k4 = jax.random.split(key, 4)
    bound = 1.0 / jnp.sqrt(jnp.float32(DIM_IN))
    # Linear(768, 768): weight stored pre-transposed as [in, out]
    w1 = jax.random.uniform(k1, (DIM_IN, DIM_IN), jnp.float32, -bound, bound)
    b1 = jax.random.uniform(k2, (1, DIM_IN), jnp.float32, -bound, bound)
    # BatchNorm1d(768): gamma=1, beta=0
    gamma = jnp.ones((1, DIM_IN), jnp.float32)
    beta = jnp.zeros((1, DIM_IN), jnp.float32)
    # Linear(768, num_classes)
    w2 = jax.random.uniform(k3, (DIM_IN, NUM_CLASSES), jnp.float32, -bound, bound)
    b2 = jax.random.uniform(k4, (1, NUM_CLASSES), jnp.float32, -bound, bound)
    return (w1, b1, gamma, beta, w2, b2)


def supce_reference(feats, params):
    """Pure-JAX reference using the same bf16-operand / f32-accumulate matmuls."""
    w1, b1, gamma, beta, w2, b2 = params
    h = jnp.dot(feats.astype(jnp.bfloat16), w1.astype(jnp.bfloat16),
                preferred_element_type=jnp.float32) + b1
    mean = jnp.mean(h, axis=0, keepdims=True)
    var = jnp.mean(h * h, axis=0, keepdims=True) - mean * mean
    hn = (h - mean) * lax.rsqrt(var + BN_EPS) * gamma + beta
    hn = jnp.maximum(hn, 0.0)
    return jnp.dot(hn.astype(jnp.bfloat16), w2.astype(jnp.bfloat16),
                   preferred_element_type=jnp.float32) + b2


if __name__ == "__main__":
    key = jax.random.PRNGKey(0)
    pkey, xkey = jax.random.split(key)
    params = init_params(pkey)

    # TODO(synk): the frozen DINOv2 ViT-B/14 backbone is a pretrained torch.hub
    # model with no clean in-script Pallas equivalent; the kernel takes its
    # [B, 768] feature output as the input tensor instead of raw NCHW images.
    batch = 2
    feats = jax.random.normal(xkey, (batch, DIM_IN), jnp.float32)
    ref = supce_reference(feats, params)

    # Fused single-call path (default for small batches).
    out = supce_forward(feats, params)
    jax.block_until_ready(out)
    assert out.shape == (batch, NUM_CLASSES) and out.dtype == jnp.float32
    err = float(jnp.max(jnp.abs(out - ref)))
    assert err < 5e-2, f"fused path max abs error vs reference: {err}"

    # Two-pass fallback path on the same input.
    out2p = supce_forward(feats, params, force_two_pass=True)
    jax.block_until_ready(out2p)
    err2p = float(jnp.max(jnp.abs(out2p - ref)))
    assert err2p < 5e-2, f"two-pass path max abs error vs reference: {err2p}"

    # Multi-block (nb > 1) exercise at small shapes, both paths.
    batch_mb = 40
    feats_mb = jax.random.normal(jax.random.PRNGKey(1), (batch_mb, DIM_IN),
                                 jnp.float32)
    ref_mb = supce_reference(feats_mb, params)
    for force in (False, True):
        out_mb = supce_forward(feats_mb, params, block_m=16,
                               force_two_pass=force)
        jax.block_until_ready(out_mb)
        err_mb = float(jnp.max(jnp.abs(out_mb - ref_mb)))
        assert err_mb < 5e-2, (
            f"multi-block (force_two_pass={force}) max abs error: {err_mb}")

    print("KERNEL_OK")
</pallas_src>

<mosaic_0001>
module attributes {stable_mosaic.version = 11 : i64} {
  func.func @fused_kernel(%arg0: i32, %arg1: i32, %arg2: memref<16x768xbf16, #tpu.memory_space<vmem>>, %arg3: memref<768x768xbf16, #tpu.memory_space<vmem>>, %arg4: memref<1x768xf32, #tpu.memory_space<vmem>>, %arg5: memref<1x768xf32, #tpu.memory_space<vmem>>, %arg6: memref<768x128xbf16, #tpu.memory_space<vmem>>, %arg7: memref<1x128xf32, #tpu.memory_space<vmem>>, %arg8: memref<16x128xf32, #tpu.memory_space<vmem>>, %arg9: memref<1x16x768xbf16, #tpu.memory_space<vmem>>, %arg10: memref<2x768xf32, #tpu.memory_space<vmem>>) attributes {dimension_semantics = [#tpu.dimension_semantics<arbitrary>, #tpu.dimension_semantics<arbitrary>], iteration_bounds = array<i64: 2, 1>, scalar_prefetch = 0 : i64, scratch_operands = 2 : i64, tpu.core_type = #tpu.core_type<tc>, window_params = [{transform_indices = @transform_0, window_bounds = array<i64: 16, 768>}, {pipeline_mode = #tpu.pipeline_mode<synchronous>, transform_indices = @transform_1, window_bounds = array<i64: 768, 768>}, {pipeline_mode = #tpu.pipeline_mode<synchronous>, transform_indices = @transform_2, window_bounds = array<i64: 1, 768>}, {pipeline_mode = #tpu.pipeline_mode<synchronous>, transform_indices = @transform_3, window_bounds = array<i64: 1, 768>}, {pipeline_mode = #tpu.pipeline_mode<synchronous>, transform_indices = @transform_4, window_bounds = array<i64: 768, 128>}, {pipeline_mode = #tpu.pipeline_mode<synchronous>, transform_indices = @transform_5, window_bounds = array<i64: 1, 128>}, {transform_indices = @transform_6, window_bounds = array<i64: 16, 128>}]} {
    %c0_i32 = arith.constant 0 : i32
    %0 = arith.cmpi eq, %arg0, %c0_i32 : i32
    %1 = arith.extui %0 : i1 to i32
    %c0_i32_0 = arith.constant 0 : i32
    %2 = arith.cmpi ne, %1, %c0_i32_0 : i32
    scf.if %2 {
      %c0_i32_2 = arith.constant 0 : i32
      %6 = arith.cmpi eq, %arg1, %c0_i32_2 : i32
      %7 = arith.extui %6 : i1 to i32
      %c0_i32_3 = arith.constant 0 : i32
      %8 = arith.cmpi ne, %7, %c0_i32_3 : i32
      scf.if %8 {
        %cst_18 = arith.constant 0.000000e+00 : f32
        %28 = vector.broadcast %cst_18 : f32 to vector<2x768xf32>
        %c0_19 = arith.constant 0 : index
        %c0_20 = arith.constant 0 : index
        %29 = vector.load %arg10[%c0_19, %c0_20] : memref<2x768xf32, #tpu.memory_space<vmem>>, vector<2x768xf32>
        tpu.vector_store %arg10[%c0_19, %c0_20], %28 {strides = array<i32>} : memref<2x768xf32, #tpu.memory_space<vmem>>, vector<2x768xf32>,
      } else {
      }
      %c0 = arith.constant 0 : index
      %c0_4 = arith.constant 0 : index
      %9 = vector.load %arg2[%c0, %c0_4] : memref<16x768xbf16, #tpu.memory_space<vmem>>, vector<16x768xbf16>
      %c0_5 = arith.constant 0 : index
      %c0_6 = arith.constant 0 : index
      %10 = vector.load %arg3[%c0_5, %c0_6] : memref<768x768xbf16, #tpu.memory_space<vmem>>, vector<768x768xbf16>
      %cst = arith.constant dense<0.000000e+00> : vector<16x768xf32>
      %11 = tpu.matmul %9, %10, %cst {dimension_numbers = #tpu.dot_dimension_numbers<[1], [0], [0], [1], [0, 0, 1, 1], [], []>} : vector<16x768xbf16>, vector<768x768xbf16>, vector<16x768xf32> -> vector<16x768xf32>
      %12 = arith.truncf %11 : vector<16x768xf32> to vector<16x768xbf16>
      %13 = arith.index_cast %arg1 : i32 to index
      %c0_7 = arith.constant 0 : index
      %c0_8 = arith.constant 0 : index
      %14 = vector.load %arg9[%13, %c0_7, %c0_8] : memref<1x16x768xbf16, #tpu.memory_space<vmem>>, vector<1x16x768xbf16>
      %15 = vector.shape_cast %14 : vector<1x16x768xbf16> to vector<16x768xbf16>
      %16 = vector.shape_cast %12 : vector<16x768xbf16> to vector<1x16x768xbf16>
      tpu.vector_store %arg9[%13, %c0_7, %c0_8], %16 {strides = array<i32>} : memref<1x16x768xbf16, #tpu.memory_space<vmem>>, vector<1x16x768xbf16>,
      %c0_9 = arith.constant 0 : index
      %c0_10 = arith.constant 0 : index
      %17 = vector.load %arg10[%c0_9, %c0_10] : memref<2x768xf32, #tpu.memory_space<vmem>>, vector<1x768xf32>
      %cst_11 = arith.constant dense<0.000000e+00> : vector<768xf32>
      %18 = vector.multi_reduction <add>, %11, %cst_11 [0] : vector<16x768xf32> to vector<768xf32>
      %19 = vector.shape_cast %18 : vector<768xf32> to vector<1x768xf32>
      %20 = arith.addf %17, %19 : vector<1x768xf32>
      %c0_12 = arith.constant 0 : index
      %c0_13 = arith.constant 0 : index
      %21 = vector.load %arg10[%c0_12, %c0_13] : memref<2x768xf32, #tpu.memory_space<vmem>>, vector<1x768xf32>
      tpu.vector_store %arg10[%c0_12, %c0_13], %20 {strides = array<i32>} : memref<2x768xf32, #tpu.memory_space<vmem>>, vector<1x768xf32>,
      %c1 = arith.constant 1 : index
      %c0_14 = arith.constant 0 : index
      %22 = vector.load %arg10[%c1, %c0_14] : memref<2x768xf32, #tpu.memory_space<vmem>>, vector<1x768xf32>
      %23 = arith.mulf %11, %11 : vector<16x768xf32>
      %cst_15 = arith.constant dense<0.000000e+00> : vector<768xf32>
      %24 = vector.multi_reduction <add>, %23, %cst_15 [0] : vector<16x768xf32> to vector<768xf32>
      %25 = vector.shape_cast %24 : vector<768xf32> to vector<1x768xf32>
      %26 = arith.addf %22, %25 : vector<1x768xf32>
      %c1_16 = arith.constant 1 : index
      %c0_17 = arith.constant 0 : index
      %27 = vector.load %arg10[%c1_16, %c0_17] : memref<2x768xf32, #tpu.memory_space<vmem>>, vector<1x768xf32>
      tpu.vector_store %arg10[%c1_16, %c0_17], %26 {strides = array<i32>} : memref<2x768xf32, #tpu.memory_space<vmem>>, vector<1x768xf32>,
    } else {
    }
    %c1_i32 = arith.constant 1 : i32
    %3 = arith.cmpi eq, %arg0, %c1_i32 : i32
    %4 = arith.extui %3 : i1 to i32
    %c0_i32_1 = arith.constant 0 : i32
    %5 = arith.cmpi ne, %4, %c0_i32_1 : i32
    scf.if %5 {
      %c0 = arith.constant 0 : index
      %c0_2 = arith.constant 0 : index
      %6 = vector.load %arg10[%c0, %c0_2] : memref<2x768xf32, #tpu.memory_space<vmem>>, vector<1x768xf32>
      %cst = arith.constant 5.000000e-01 : f32
      %7 = vector.broadcast %cst : f32 to vector<1x768xf32>
      %8 = arith.mulf %6, %7 : vector<1x768xf32>
      %c1 = arith.constant 1 : index
      %c0_3 = arith.constant 0 : index
      %9 = vector.load %arg10[%c1, %c0_3] : memref<2x768xf32, #tpu.memory_space<vmem>>, vector<1x768xf32>
      %cst_4 = arith.constant 5.000000e-01 : f32
      %10 = vector.broadcast %cst_4 : f32 to vector<1x768xf32>
      %11 = arith.mulf %9, %10 : vector<1x768xf32>
      %12 = arith.mulf %8, %8 : vector<1x768xf32>
      %13 = arith.subf %11, %12 : vector<1x768xf32>
      %cst_5 = arith.constant 0.000000e+00 : f32
      %14 = vector.broadcast %cst_5 : f32 to vector<1x768xf32>
      %15 = arith.maximumf %13, %14 : vector<1x768xf32>
      %c0_6 = arith.constant 0 : index
      %c0_7 = arith.constant 0 : index
      %16 = vector.load %arg4[%c0_6, %c0_7] : memref<1x768xf32, #tpu.memory_space<vmem>>, vector<1x768xf32>
      %cst_8 = arith.constant 9.99999974E-6 : f32
      %17 = vector.broadcast %cst_8 : f32 to vector<1x768xf32>
      %18 = arith.addf %15, %17 : vector<1x768xf32>
      %19 = math.rsqrt %18 : vector<1x768xf32>
      %20 = arith.mulf %16, %19 : vector<1x768xf32>
      %c0_9 = arith.constant 0 : index
      %c0_10 = arith.constant 0 : index
      %21 = vector.load %arg5[%c0_9, %c0_10] : memref<1x768xf32, #tpu.memory_space<vmem>>, vector<1x768xf32>
      %22 = arith.mulf %8, %20 : vector<1x768xf32>
      %23 = arith.subf %21, %22 : vector<1x768xf32>
      %24 = arith.index_cast %arg1 : i32 to index
      %c0_11 = arith.constant 0 : index
      %c0_12 = arith.constant 0 : index
      %25 = vector.load %arg9[%24, %c0_11, %c0_12] : memref<1x16x768xbf16, #tpu.memory_space<vmem>>, vector<1x16x768xbf16>
      %26 = vector.shape_cast %25 : vector<1x16x768xbf16> to vector<16x768xbf16>
      %27 = arith.extf %26 : vector<16x768xbf16> to vector<16x768xf32>
      %28 = vector.broadcast %20 : vector<1x768xf32> to vector<16x768xf32>
      %29 = arith.mulf %27, %28 : vector<16x768xf32>
      %30 = vector.broadcast %23 : vector<1x768xf32> to vector<16x768xf32>
      %31 = arith.addf %29, %30 : vector<16x768xf32>
      %cst_13 = arith.constant 0.000000e+00 : f32
      %32 = vector.broadcast %cst_13 : f32 to vector<16x768xf32>
      %33 = arith.maximumf %31, %32 : vector<16x768xf32>
      %34 = arith.truncf %33 : vector<16x768xf32> to vector<16x768xbf16>
      %c0_14 = arith.constant 0 : index
      %c0_15 = arith.constant 0 : index
      %35 = vector.load %arg6[%c0_14, %c0_15] : memref<768x128xbf16, #tpu.memory_space<vmem>>, vector<768x128xbf16>
      %cst_16 = arith.constant dense<0.000000e+00> : vector<16x128xf32>
      %36 = tpu.matmul %34, %35, %cst_16 {dimension_numbers = #tpu.dot_dimension_numbers<[1], [0], [0], [1], [0, 0, 1, 1], [], []>} : vector<16x768xbf16>, vector<768x128xbf16>, vector<16x128xf32> -> vector<16x128xf32>
      %c0_17 = arith.constant 0 : index
      %c0_18 = arith.constant 0 : index
      %37 = vector.load %arg7[%c0_17, %c0_18] : memref<1x128xf32, #tpu.memory_space<vmem>>, vector<1x128xf32>
      %38 = vector.broadcast %37 : vector<1x128xf32> to vector<16x128xf32>
      %39 = arith.addf %36, %38 : vector<16x128xf32>
      %c0_19 = arith.constant 0 : index
      %c0_20 = arith.constant 0 : index
      %40 = vector.load %arg8[%c0_19, %c0_20] : memref<16x128xf32, #tpu.memory_space<vmem>>, vector<16x128xf32>
      tpu.vector_store %arg8[%c0_19, %c0_20], %39 {strides = array<i32>} : memref<16x128xf32, #tpu.memory_space<vmem>>, vector<16x128xf32>,
    } else {
    }
    return
  }
  func.func @transform_0(%arg0: i32, %arg1: i32) -> (i32, i32) {
    %c1_i32 = arith.constant 1 : i32
    %0 = arith.subi %c1_i32, %arg0 : i32
    %1 = arith.muli %arg1, %0 : i32
    %c0_i32 = arith.constant 0 : i32
    %c0_i32_0 = arith.constant 0 : i32
    return %1, %c0_i32 : i32, i32
  }
  func.func @transform_1(%arg0: i32, %arg1: i32) -> (i32, i32) {
    %c0_i32 = arith.constant 0 : i32
    %c0_i32_0 = arith.constant 0 : i32
    %c0_i32_1 = arith.constant 0 : i32
    return %c0_i32, %c0_i32_0 : i32, i32
  }
  func.func @transform_2(%arg0: i32, %arg1: i32) -> (i32, i32) {
    %c0_i32 = arith.constant 0 : i32
    %c0_i32_0 = arith.constant 0 : i32
    %c0_i32_1 = arith.constant 0 : i32
    return %c0_i32, %c0_i32_0 : i32, i32
  }
  func.func @transform_3(%arg0: i32, %arg1: i32) -> (i32, i32) {
    %c0_i32 = arith.constant 0 : i32
    %c0_i32_0 = arith.constant 0 : i32
    %c0_i32_1 = arith.constant 0 : i32
    return %c0_i32, %c0_i32_0 : i32, i32
  }
  func.func @transform_4(%arg0: i32, %arg1: i32) -> (i32, i32) {
    %c0_i32 = arith.constant 0 : i32
    %c0_i32_0 = arith.constant 0 : i32
    %c0_i32_1 = arith.constant 0 : i32
    return %c0_i32, %c0_i32_0 : i32, i32
  }
  func.func @transform_5(%arg0: i32, %arg1: i32) -> (i32, i32) {
    %c0_i32 = arith.constant 0 : i32
    %c0_i32_0 = arith.constant 0 : i32
    %c0_i32_1 = arith.constant 0 : i32
    return %c0_i32, %c0_i32_0 : i32, i32
  }
  func.func @transform_6(%arg0: i32, %arg1: i32) -> (i32, i32) {
    %0 = arith.muli %arg1, %arg0 : i32
    %c0_i32 = arith.constant 0 : i32
    %c0_i32_0 = arith.constant 0 : i32
    return %0, %c0_i32 : i32, i32
  }
}

</mosaic_0001>

<bundles_post_ra>
// kernel: tpu_custom_call.1
= control target key start
LH: loop header
LB: loop body
LE: loop exit
PB: predicated region body
PF: predicated region fallthrough
CT: control target
= control target key end

     0   :  { %11 = vsyncpa [#allocation5], 0  ;;  %s5186_s0 = inlined_call_operand.hbm [shape: bf16[16,768], index: 0, kind: input, shape index: {}]   ;;  %s5187_s1 = inlined_call_operand.hbm [shape: bf16[768,768], index: 1, kind: input, shape index: {}]   ;;  %s5188_s2 = inlined_call_operand.hbm [shape: f32[1,768], index: 2, kind: input, shape index: {}]   ;;  %s5189_s3 = inlined_call_operand.hbm [shape: f32[1,768], index: 3, kind: input, shape index: {}]   ;;  %s5190_s4 = inlined_call_operand.hbm [shape: bf16[768,128], index: 4, kind: input, shape index: {}]   ;;  %s5191_s5 = inlined_call_operand.hbm [shape: f32[1,128], index: 5, kind: input, shape index: {}]   ;;  %s5192_s6 = inlined_call_operand.hbm [shape: f32[16,128], index: 6, kind: output, shape index: {}]  }
   0x1   :  { %13 = vsyncpa [#allocation5 + $0x1], 0 }
   0x2   :  { %14 = vsyncpa [#allocation8], 0 }
   0x3   :  { %15 = vsyncpa [#allocation11], 0 }
   0x4   :  { %16 = vsyncpa [#allocation14], 0 }
   0x5   :  { %17 = vsyncpa [#allocation6], 0 }
   0x6   :  { %19 = vsyncpa [#allocation6 + $0x1], 0  ;;  %s4893_s21 = smov 0   ;;  %s4895_s22 = smov 0  }
   0x7   :  { %s4897_s23 = smov 0  }
   0x8 LB: > { %s5196_s24 = sadd.s32 4294967295, %s4841_s23   ;;  %s37_s26 = sadd.s32 1, %s4837_s22  ;;  %s4841_s23 = sphi %s4897_s23, %s25_s23   ;;  %s4837_s22 = sphi %s4895_s22, %s5211_s22   ;;  %s4833_s21 = sphi %s4893_s21, %s5210_s21  }
   0x9   : > { %p3551_p0 = scmp.ge.s32.totalorder %s4841_s23, 1  ;;  %p39_p1 = scmp.ge.s32.totalorder %s37_s26, 2 }
   0xa   : > { %p205_p2 = scmp.lt.s32.totalorder %s4841_s23, 3  ;;  %p4915_p3 = scmp.eq.s32.totalorder %s5196_s24, 0 }
   0xb   : > { %s5213_s26 = smov (%p39_p1, %s37_s26), 0  ;;  %s4843_s29 = smov [#allocation7]  }
   0xc   : > { %s5197_s27 = scalar_select %p4915_p3, 1, 0 }
   0xd   : > { %p4921_p4 = pnand %p3551_p0, %p205_p2  ;;  %s217_s30 = sshll.u32 %s4843_s29, 4  ;;  %s218_s30 = int_to_ptr.vmem [resolvable:$true] %s217_s30 }
   0xe   : > { %s4844_s8 = smov [#allocation10]   ;;  %s4605_s12 = scalar_lea.hbm %s5187_s1, 36864 }
   0xf   : > { %s5198_s28 = scalar_select %p4921_p4, 1, 0 }
  0x10   : > { %p4033_p5 = pneg %p4921_p4  ;;  %s242_s9 = sshll.u32 %s4844_s8, 4  ;;  %s243_s9 = int_to_ptr.vmem [resolvable:$true] %s242_s9 }
  0x11   : > { %p4606_p8 = scmp.ne.s32.totalorder %s5187_s1, %s4605_s12  ;;  %p4612_p12 = scmp.lt.u32.totalorder %s4605_s12, %s5187_s1 }
  0x12   : > { %p4930_p7 = pnand %p4915_p3, %p4033_p5 }
  0x14   : > { %p4942_p9 = pneg %p4930_p7 }
  0x16   : > { %p4608_p10 = pnand %p4942_p9, %p4606_p8 }
  0x18   : > { %p4609_p11 = pneg %p4608_p10 }
  0x1a   : > { %p4614_p13 = pnand %p4612_p12, %p4609_p11 }
  0x1c   : > { %4617 = shalt.err (!%p4614_p13)
}
  0x1d   : > { %s4618_s18 = scalar_lea.vmem %s218_s30, 36864  ;;  %p4626_p5 = scmp.lt.s32.totalorder %s218_s30, %s218_s30 }
  0x1e   : > { %p4619_p0 = scmp.ne.s32.totalorder %s218_s30, %s4618_s18  ;;  %p4627_p6 = scmp.lt.s32.totalorder %s4618_s18, %s4618_s18 }
  0x20   : > { %p4621_p1 = pnand %p4619_p0, %p4942_p9  ;;  %p4628_p3 = por %p4627_p6, %p4626_p5 }
  0x22   : > { %p4622_p2 = pneg %p4621_p1 }
  0x24   : > { %p4629_p4 = pnand %p4628_p3, %p4622_p2 }
  0x26   : > { %4632 = shalt.err (!%p4629_p4)
}
  0x27   : > { %s4845_s19 = smov 384   ;;  %s4846_s20 = smov 24  }
  0x28   : > { %4036 = dma.hbm_to_vmem [thread:$0]  (!%p4930_p7), %s5187_s1, 36864, %s218_s30, [#allocation8], %s4845_s19, %s4845_s19, %s4846_s20  }
  0x29   : > { %s4847_s10 = smov [#allocation9]   ;;  %s4633_s14 = scalar_lea.hbm %s5189_s3, 96 }
  0x2a   : > { %s231_s11 = sshll.u32 %s4847_s10, 4  ;;  %p4634_p3 = scmp.ne.s32.totalorder %s5189_s3, %s4633_s14  ;;  %s232_s11 = int_to_ptr.vmem [resolvable:$true] %s231_s11 }
  0x2b   : > { %p4640_p8 = scmp.lt.u32.totalorder %s4633_s14, %s5189_s3 }
  0x2c   : > { %p4636_p4 = pnand %p4634_p3, %p4942_p9 }
  0x2e   : > { %p4637_p6 = pneg %p4636_p4 }
  0x30   : > { %p4642_p10 = pnand %p4640_p8, %p4637_p6 }
  0x32   : > { %4645 = shalt.err (!%p4642_p10)
}
  0x33   : > { %s4646_s30 = scalar_lea.vmem %s243_s9, 96  ;;  %p4654_p0 = scmp.lt.s32.totalorder %s243_s9, %s243_s9 }
  0x34   : > { %p4647_p11 = scmp.ne.s32.totalorder %s243_s9, %s4646_s30  ;;  %p4655_p1 = scmp.lt.s32.totalorder %s4646_s30, %s4646_s30 }
  0x36   : > { %p4649_p12 = pnand %p4647_p11, %p4942_p9  ;;  %p4656_p2 = por %p4655_p1, %p4654_p0 }
  0x38   : > { %p4650_p13 = pneg %p4649_p12 }
  0x3a   : > { %p4657_p5 = pnand %p4656_p2, %p4650_p13 }
  0x3c   : > { %4660 = shalt.err (!%p4657_p5)
}
  0x3d   : > { %4042 = dma.hbm_to_vmem [thread:$0]  (!%p4930_p7), %s5189_s3, 96, %s243_s9, [#allocation11]  }
  0x3e   : > { %s4661_s12 = scalar_lea.hbm %s5188_s2, 96 }
  0x3f   : > { %p4662_p3 = scmp.ne.s32.totalorder %s5188_s2, %s4661_s12  ;;  %p4668_p8 = scmp.lt.u32.totalorder %s4661_s12, %s5188_s2 }
  0x41   : > { %p4664_p4 = pnand %p4662_p3, %p4942_p9 }
  0x43   : > { %p4665_p6 = pneg %p4664_p4 }
  0x45   : > { %p4670_p10 = pnand %p4668_p8, %p4665_p6 }
  0x47   : > { %4673 = shalt.err (!%p4670_p10)
}
  0x48   : > { %s4674_s18 = scalar_lea.vmem %s232_s11, 96  ;;  %p4682_p0 = scmp.lt.s32.totalorder %s232_s11, %s232_s11 }
  0x49   : > { %p4675_p11 = scmp.ne.s32.totalorder %s232_s11, %s4674_s18  ;;  %p4683_p1 = scmp.lt.s32.totalorder %s4674_s18, %s4674_s18 }
  0x4b   : > { %p4677_p12 = pnand %p4675_p11, %p4942_p9  ;;  %p4684_p2 = por %p4683_p1, %p4682_p0 }
  0x4d   : > { %p4678_p13 = pneg %p4677_p12 }
  0x4f   : > { %p4685_p5 = pnand %p4684_p2, %p4678_p13 }
  0x51   : > { %4688 = shalt.err (!%p4685_p5)
}
  0x52   : > { %4039 = dma.hbm_to_vmem [thread:$0]  (!%p4930_p7), %s5188_s2, 96, %s232_s11, [#allocation8]  }
  0x53   : > { %s4848_s29 = smov [#allocation12]   ;;  %s4689_s12 = scalar_lea.hbm %s5190_s4, 6144 }
  0x54   : > { %s252_s8 = sshll.u32 %s4848_s29, 4  ;;  %p4690_p3 = scmp.ne.s32.totalorder %s5190_s4, %s4689_s12  ;;  %s253_s8 = int_to_ptr.vmem [resolvable:$true] %s252_s8 }
  0x55   : > { %p4696_p8 = scmp.lt.u32.totalorder %s4689_s12, %s5190_s4 }
  0x56   : > { %p4692_p4 = pnand %p4690_p3, %p4942_p9 }
  0x58   : > { %p4693_p6 = pneg %p4692_p4 }
  0x5a   : > { %p4698_p10 = pnand %p4696_p8, %p4693_p6 }
  0x5c   : > { %4701 = shalt.err (!%p4698_p10)
}
  0x5d   : > { %s4702_s11 = scalar_lea.vmem %s253_s8, 6144  ;;  %p4710_p0 = scmp.lt.s32.totalorder %s253_s8, %s253_s8 }
  0x5e   : > { %p4703_p11 = scmp.ne.s32.totalorder %s253_s8, %s4702_s11  ;;  %p4711_p1 = scmp.lt.s32.totalorder %s4702_s11, %s4702_s11 }
  0x60   : > { %p4705_p12 = pnand %p4703_p11, %p4942_p9  ;;  %p4712_p2 = por %p4711_p1, %p4710_p0 }
  0x62   : > { %p4706_p13 = pneg %p4705_p12 }
  0x64   : > { %p4713_p5 = pnand %p4712_p2, %p4706_p13 }
  0x66   : > { %4716 = shalt.err (!%p4713_p5)
}
  0x67   : > { %s4849_s18 = smov 64   ;;  %s4850_s9 = smov 4  }
  0x68   : > { %4045 = dma.hbm_to_vmem [thread:$0]  (!%p4930_p7), %s5190_s4, 6144, %s253_s8, [#allocation11], %s4849_s18, %s4849_s18, %s4850_s9  }
  0x69   : > { %s4851_s25 = smov [#allocation13]   ;;  %s4717_s14 = scalar_lea.hbm %s5191_s5, 16 }
  0x6a   : > { %s266_s10 = sshll.u32 %s4851_s25, 4  ;;  %p4718_p6 = scmp.ne.s32.totalorder %s5191_s5, %s4717_s14  ;;  %s267_s10 = int_to_ptr.vmem [resolvable:$true] %s266_s10 }
  0x6b   : > { %p4724_p11 = scmp.lt.u32.totalorder %s4717_s14, %s5191_s5 }
  0x6c   : > { %p4720_p8 = pnand %p4718_p6, %p4942_p9 }
  0x6e   : > { %p4721_p10 = pneg %p4720_p8 }
  0x70   : > { %p4726_p12 = pnand %p4724_p11, %p4721_p10 }
  0x72   : > { %4729 = shalt.err (!%p4726_p12)
}
  0x73   : > { %s4730_s8 = scalar_lea.vmem %s267_s10, 16  ;;  %s4737_s18 = scalar_lea.vmem %s267_s10, 32 }
  0x74   : > { %p4731_p13 = scmp.ne.s32.totalorder %s267_s10, %s4730_s8  ;;  %p4738_p2 = scmp.lt.s32.totalorder %s267_s10, %s267_s10 }
  0x75   : > { %p4739_p5 = scmp.lt.s32.totalorder %s4737_s18, %s4730_s8 }
  0x76   : > { %p4733_p0 = pnand %p4731_p13, %p4942_p9 }
  0x77   : > { %p4740_p4 = por %p4739_p5, %p4738_p2 }
  0x78   : > { %p4734_p1 = pneg %p4733_p0 }
  0x7a   : > { %p4741_p3 = pnand %p4740_p4, %p4734_p1 }
  0x7c   : > { %4744 = shalt.err (!%p4741_p3)
}
  0x7d   : > { %4048 = dma.hbm_to_vmem [thread:$0]  (!%p4930_p7), %s5191_s5, 16, %s267_s10, [#allocation14]  }
  0x7e   : > { %s4852_s24 = smov [#allocation4]   ;;  %p5201_p6 = scmp.lt.s32.totalorder %s4841_s23, 2 }
  0x7f   : > { %s291_s29 = sshll.u32 %s4852_s24, 4  ;;  %p5202_p8 = scmp.eq.s32.totalorder %s4841_s23, 0  ;;  %s292_s29 = int_to_ptr.vmem [resolvable:$true] %s291_s29 }
  0x80   : > { %s4745_s7 = scalar_lea.hbm %s5186_s0, 768 }
  0x81   : > { %p5039_p9 = pnand %p5202_p8, %p5201_p6  ;;  %p4746_p3 = scmp.ne.s32.totalorder %s5186_s0, %s4745_s7 }
  0x82   : > { %p4752_p11 = scmp.lt.u32.totalorder %s4745_s7, %s5186_s0 }
  0x83   : > { %p4747_p7 = pneg %p5039_p9 }
  0x85   : > { %p4748_p4 = pnand %p4747_p7, %p4746_p3 }
  0x87   : > { %p4749_p10 = pneg %p4748_p4 }
  0x89   : > { %p4754_p12 = pnand %p4752_p11, %p4749_p10 }
  0x8b   : > { %4757 = shalt.err (!%p4754_p12)
}
  0x8c   : > { %s4758_s17 = scalar_lea.vmem %s292_s29, 768  ;;  %s4765_s11 = scalar_lea.vmem %s292_s29, 1536 }
  0x8d   : > { %p4759_p13 = scmp.ne.s32.totalorder %s292_s29, %s4758_s17  ;;  %p4766_p2 = scmp.lt.s32.totalorder %s292_s29, %s292_s29 }
  0x8e   : > { %p4767_p5 = scmp.lt.s32.totalorder %s4765_s11, %s4758_s17 }
  0x8f   : > { %p4761_p0 = pnand %p4759_p13, %p4747_p7 }
  0x90   : > { %p4768_p6 = por %p4767_p5, %p4766_p2 }
  0x91   : > { %p4762_p1 = pneg %p4761_p0 }
  0x93   : > { %p4769_p8 = pnand %p4768_p6, %p4762_p1 }
  0x95   : > { %4772 = shalt.err (!%p4769_p8)
}
  0x96   : > { %4052 = dma.hbm_to_vmem [thread:$0]  (!%p5039_p9), %s5186_s0, 768, %s292_s29, [#allocation5], %s4845_s19, %s4845_s19, %s4846_s20  }
  0x97   : > { %p5204_p3 = scmp.ne.s32.totalorder %s5198_s28, 0 }
  0x98   : > { %p5205_p7 = scmp.ne.s32.totalorder (!%p5204_p3), %s5197_s27, 0 }
  0x99   : > { %303 = sbr.rel (%p5204_p3) target bundleno = 1057 (0x421), region = 44 }
  0xa0   : > { %4812 = dma.done.wait (%p5205_p7), [#allocation5], 768  }
  0xa1   : > { %4814 = vsyncadd (%p5205_p7), [#allocation5], 4294966528 }
  0xa2   : > { %4816 = dma.done.wait (%p5205_p7), [#allocation8], 36960  }
  0xa3   : > { %4818 = vsyncadd (%p5205_p7), [#allocation8], 4294930336 }
  0xa4   : > { %4820 = dma.done.wait (%p5205_p7), [#allocation11], 6240  }
  0xa5   : > { %4822 = vsyncadd (%p5205_p7), [#allocation11], 4294961056 }
  0xa6   : > { %4824 = dma.done.wait (%p5205_p7), [#allocation14], 16  }
  0xa7   : > { %4826 = vsyncadd (%p5205_p7), [#allocation14], 4294967280  ;;  %p3566_p9 = scmp.ne.s32.totalorder %s4833_s21, 0 }
  0xa8   : > { %v4112_v0 = vld [vmem:[#allocation7 + $0x4] ss:$24 sps:$4 sm:$0xff] (!%p3566_p9)   ;;  %v4116_v2 = vld [vmem:[#allocation7] ss:$24 sps:$4 sm:$0xff] (!%p3566_p9)   ;;  %v4118_v4 = vld [vmem:[#allocation7 + $0x34] ss:$24 sps:$4 sm:$0xff] (!%p3566_p9)  }
  0xa9   : > { %367 = sbr.rel (%p3566_p9) target bundleno = 732 (0x2dc), region = 72  ;;  %v4114_v1 = vld [vmem:[#allocation7 + $0x304] ss:$24 sps:$4 sm:$0xff] (!%p3566_p9)   ;;  %2138 = vmatprep.subr.bf16.mxu1 (!%p3566_p9), %v4112_v0  ;;  %v4117_v3 = vld [vmem:[#allocation7 + $0x300] ss:$24 sps:$4 sm:$0xff] (!%p3566_p9)  }
  0xaa   : > { %2181 = vmatprep.subr.bf16.mxu0 (!%p3566_p9), %v4114_v1  ;;  %2139 = vmatpush1.bf16.msra.mxu1 (!%p3566_p9), %v4116_v2  ;;  %v4120_v5 = vld [vmem:[#allocation7 + $0x334] ss:$24 sps:$4 sm:$0xff] (!%p3566_p9)   ;;  %v4122_v6 = vld [vmem:[#allocation7 + $0x30] ss:$24 sps:$4 sm:$0xff] (!%p3566_p9)   ;;  %v4124_v8 = vld [vmem:[#allocation7 + $0x64] ss:$24 sps:$4 sm:$0xff] (!%p3566_p9)  }
  0xab   : > { %2182 = vmatpush1.bf16.msra.mxu0 (!%p3566_p9), %v4117_v3  ;;  %2140 = vmatprep.subr.bf16.mxu1 (!%p3566_p9), %v4118_v4  ;;  %v4123_v7 = vld [vmem:[#allocation7 + $0x330] ss:$24 sps:$4 sm:$0xff] (!%p3566_p9)   ;;  %v4126_v9 = vld [vmem:[#allocation7 + $0x364] ss:$24 sps:$4 sm:$0xff] (!%p3566_p9)   ;;  %v4128_v10 = vld [vmem:[#allocation7 + $0x60] ss:$24 sps:$4 sm:$0xff] (!%p3566_p9)  }
  0xac   : > { %2183 = vmatprep.subr.bf16.mxu0 (!%p3566_p9), %v4120_v5  ;;  %v4129_v11 = vld [vmem:[#allocation7 + $0x360] ss:$24 sps:$4 sm:$0xff] (!%p3566_p9)   ;;  %v4130_v12 = vld [vmem:[#allocation7 + $0x94] ss:$24 sps:$4 sm:$0xff] (!%p3566_p9)   ;;  %v4134_v14 = vld [vmem:[#allocation7 + $0x90] ss:$24 sps:$4 sm:$0xff] (!%p3566_p9)  }
  0xad   : > { %v4132_v13 = vld [vmem:[#allocation7 + $0x394] ss:$24 sps:$4 sm:$0xff] (!%p3566_p9)   ;;  %v4135_v15 = vld [vmem:[#allocation7 + $0x390] ss:$24 sps:$4 sm:$0xff] (!%p3566_p9)   ;;  %v4136_v16 = vld [vmem:[#allocation7 + $0xc4] ss:$24 sps:$4 sm:$0xff] (!%p3566_p9)  }
  0xae   : > { %2141 = vmatpush1.bf16.msra.mxu1 (!%p3566_p9), %v4122_v6  ;;  %v4138_v17 = vld [vmem:[#allocation7 + $0x3c4] ss:$24 sps:$4 sm:$0xff] (!%p3566_p9)   ;;  %v4140_v18 = vld [vmem:[#allocation7 + $0xc0] ss:$24 sps:$4 sm:$0xff] (!%p3566_p9)   ;;  %v4142_v20 = vld [vmem:[#allocation7 + $0xf4] ss:$24 sps:$4 sm:$0xff] (!%p3566_p9)  }
  0xaf   : > { %2184 = vmatpush1.bf16.msra.mxu0 (!%p3566_p9), %v4123_v7  ;;  %2142 = vmatprep.subr.bf16.mxu1 (!%p3566_p9), %v4124_v8  ;;  %v4141_v19 = vld [vmem:[#allocation7 + $0x3c0] ss:$24 sps:$4 sm:$0xff] (!%p3566_p9)   ;;  %v4144_v21 = vld [vmem:[#allocation7 + $0x3f4] ss:$24 sps:$4 sm:$0xff] (!%p3566_p9)   ;;  %v4146_v22 = vld [vmem:[#allocation7 + $0xf0] ss:$24 sps:$4 sm:$0xff] (!%p3566_p9)  }
  0xb0   : > { %2185 = vmatprep.subr.bf16.mxu0 %v4126_v9  ;;  %v4147_v23 = vld [vmem:[#allocation7 + $0x3f0] ss:$24 sps:$4 sm:$0xff]   ;;  %v4148_v24 = vld [vmem:[#allocation7 + $0x124] ss:$24 sps:$4 sm:$0xff]   ;;  %v4152_v26 = vld [vmem:[#allocation7 + $0x120] ss:$24 sps:$4 sm:$0xff]  }
  0xb1   : > { %v4150_v25 = vld [vmem:[#allocation7 + $0x424] ss:$24 sps:$4 sm:$0xff]   ;;  %v4153_v27 = vld [vmem:[#allocation7 + $0x420] ss:$24 sps:$4 sm:$0xff]   ;;  %v4154_v28 = vld [vmem:[#allocation7 + $0x154] ss:$24 sps:$4 sm:$0xff]  }
  0xb2   : > { %2143 = vmatpush1.bf16.msra.mxu1 %v4128_v10  ;;  %v4156_v29 = vld [vmem:[#allocation7 + $0x454] ss:$24 sps:$4 sm:$0xff]   ;;  %v4158_v30 = vld [vmem:[#allocation7 + $0x150] ss:$24 sps:$4 sm:$0xff]   ;;  %v4160_v32 = vld [vmem:[#allocation7 + $0x184] ss:$24 sps:$4 sm:$0xff]  }
  0xb3   : > { %2186 = vmatpush1.bf16.msra.mxu0 %v4129_v11  ;;  %2144 = vmatprep.subr.bf16.mxu1 %v4130_v12  ;;  %v4159_v31 = vld [vmem:[#allocation7 + $0x450] ss:$24 sps:$4 sm:$0xff]   ;;  %v4162_v33 = vld [vmem:[#allocation7 + $0x484] ss:$24 sps:$4 sm:$0xff]   ;;  %v4164_v34 = vld [vmem:[#allocation7 + $0x180] ss:$24 sps:$4 sm:$0xff]  }
  0xb4   : > { %2187 = vmatprep.subr.bf16.mxu0 %v4132_v13  ;;  %v4165_v35 = vld [vmem:[#allocation7 + $0x480] ss:$24 sps:$4 sm:$0xff]   ;;  %v4166_v36 = vld [vmem:[#allocation7 + $0x1b4] ss:$24 sps:$4 sm:$0xff]   ;;  %v4170_v38 = vld [vmem:[#allocation7 + $0x1b0] ss:$24 sps:$4 sm:$0xff]  }
  0xb5   : > { %v4168_v37 = vld [vmem:[#allocation7 + $0x4b4] ss:$24 sps:$4 sm:$0xff]   ;;  %v4171_v39 = vld [vmem:[#allocation7 + $0x4b0] ss:$24 sps:$4 sm:$0xff]   ;;  %v4172_v40 = vld [vmem:[#allocation7 + $0x1e4] ss:$24 sps:$4 sm:$0xff]  }
  0xb6   : > { %2145 = vmatpush1.bf16.msra.mxu1 %v4134_v14  ;;  %v4174_v41 = vld [vmem:[#allocation7 + $0x4e4] ss:$24 sps:$4 sm:$0xff]   ;;  %v4176_v42 = vld [vmem:[#allocation7 + $0x1e0] ss:$24 sps:$4 sm:$0xff]   ;;  %v4178_v44 = vld [vmem:[#allocation7 + $0x214] ss:$24 sps:$4 sm:$0xff]  }
  0xb7   : > { %2188 = vmatpush1.bf16.msra.mxu0 %v4135_v15  ;;  %2146 = vmatprep.subr.bf16.mxu1 %v4136_v16  ;;  %v4177_v43 = vld [vmem:[#allocation7 + $0x4e0] ss:$24 sps:$4 sm:$0xff]   ;;  %v4180_v45 = vld [vmem:[#allocation7 + $0x514] ss:$24 sps:$4 sm:$0xff]   ;;  %v4182_v46 = vld [vmem:[#allocation7 + $0x210] ss:$24 sps:$4 sm:$0xff]  }
  0xb8   : > { %2189 = vmatprep.subr.bf16.mxu0 %v4138_v17  ;;  %v4183_v47 = vld [vmem:[#allocation7 + $0x510] ss:$24 sps:$4 sm:$0xff]   ;;  %v5081_v48 = vld [vmem:[#allocation4 + $0x4] ss:$24 sps:$4 sm:$0xff]   ;;  %v4188_v52 = vld [vmem:[#allocation7 + $0x240] ss:$24 sps:$4 sm:$0xff]  }
  0xb9   : > { %v5083_v49 = vld [vmem:[#allocation4 + $0xc] ss:$24 sps:$4 sm:$0xff]   ;;  %2170 = vmatprep.mubr.bf16.mxu1 %v5081_v48  ;;  %v4189_v53 = vld [vmem:[#allocation7 + $0x540] ss:$24 sps:$4 sm:$0xff]   ;;  %v4194_v56 = vld [vmem:[#allocation7 + $0x270] ss:$24 sps:$4 sm:$0xff]  }
  0xba   : > { %2147 = vmatpush1.bf16.msra.mxu1 %v4140_v18  ;;  %v4184_v50 = vld [vmem:[#allocation7 + $0x244] ss:$24 sps:$4 sm:$0xff]   ;;  %2213 = vmatprep.mubr.bf16.mxu0 %v5083_v49  ;;  %v4190_v54 = vld [vmem:[#allocation7 + $0x274] ss:$24 sps:$4 sm:$0xff]   ;;  %v4195_v57 = vld [vmem:[#allocation7 + $0x570] ss:$24 sps:$4 sm:$0xff]  }
  0xbb   : > { %2190 = vmatpush1.bf16.msra.mxu0 %v4141_v19  ;;  %2148 = vmatprep.subr.bf16.mxu1 %v4142_v20  ;;  %v4186_v51 = vld [vmem:[#allocation7 + $0x544] ss:$24 sps:$4 sm:$0xff]   ;;  %v4192_v55 = vld [vmem:[#allocation7 + $0x574] ss:$24 sps:$4 sm:$0xff]   ;;  %v4200_v60 = vld [vmem:[#allocation7 + $0x2a0] ss:$24 sps:$4 sm:$0xff]  }
  0xbc   : > { %2191 = vmatprep.subr.bf16.mxu0 %v4144_v21  ;;  %v4196_v58 = vld [vmem:[#allocation7 + $0x2a4] ss:$24 sps:$4 sm:$0xff]   ;;  %v4201_v61 = vld [vmem:[#allocation7 + $0x5a0] ss:$24 sps:$4 sm:$0xff]   ;;  %v4202_v62 = vld [vmem:[#allocation7 + $0x2d4] ss:$24 sps:$4 sm:$0xff]  }
  0xbd   : > { %v4198_v59 = vld [vmem:[#allocation7 + $0x5a4] ss:$24 sps:$4 sm:$0xff]   ;;  %v4204_v63 = vld [vmem:[#allocation7 + $0x5d4] ss:$24 sps:$4 sm:$0xff]   ;;  %v4206_v0 = vld [vmem:[#allocation7 + $0x2d0] ss:$24 sps:$4 sm:$0xff]  }
  0xbe   : > { %2149 = vmatpush1.bf16.msra.mxu1 %v4146_v22  ;;  %v4207_v1 = vld [vmem:[#allocation7 + $0x5d0] ss:$24 sps:$4 sm:$0xff]   ;;  %v4214_v2 = vld [vmem:[#allocation7 + $0x604] ss:$24 sps:$4 sm:$0xff]   ;;  %v4212_v4 = vld [vmem:[#allocation7 + $0x600] ss:$24 sps:$4 sm:$0xff]  }
  0xbf   : > { %2192 = vmatpush1.bf16.msra.mxu0 %v4147_v23  ;;  %2150 = vmatprep.subr.bf16.mxu1 %v4148_v24  ;;  %v4217_v3 = vld [vmem:[#allocation7 + $0xc] ss:$24 sps:$4 sm:$0xff]   ;;  %v4215_v5 = vld [vmem:[#allocation7 + $0x8] ss:$24 sps:$4 sm:$0xff]   ;;  %v4225_v9 = vld [vmem:[#allocation7 + $0x3c] ss:$24 sps:$4 sm:$0xff]  }
  0xc0   : > { %2193 = vmatprep.subr.bf16.mxu0 %v4150_v25  ;;  %v5087_v6 = vld [vmem:[#allocation4] ss:$24 sps:$4 sm:$0xff]   ;;  %v4222_v8 = vld [vmem:[#allocation7 + $0x634] ss:$24 sps:$4 sm:$0xff]   ;;  %v4220_v10 = vld [vmem:[#allocation7 + $0x630] ss:$24 sps:$4 sm:$0xff]  }
  0xc1   : > { %v5089_v7 = vld [vmem:[#allocation4 + $0x8] ss:$24 sps:$4 sm:$0xff]   ;;  %v4223_v11 = vld [vmem:[#allocation7 + $0x38] ss:$24 sps:$4 sm:$0xff]   ;;  %v4228_v12 = vld [vmem:[#allocation7 + $0x664] ss:$24 sps:$4 sm:$0xff]  }
  0xc2   : > { %2151 = vmatpush1.bf16.msra.mxu1 %v4152_v26  ;;  %v4231_v13 = vld [vmem:[#allocation7 + $0x6c] ss:$24 sps:$4 sm:$0xff]   ;;  %v4226_v14 = vld [vmem:[#allocation7 + $0x660] ss:$24 sps:$4 sm:$0xff]   ;;  %v4237_v17 = vld [vmem:[#allocation7 + $0x9c] ss:$24 sps:$4 sm:$0xff]  }
  0xc3   : > { %2194 = vmatpush1.bf16.msra.mxu0 %v4153_v27  ;;  %2152 = vmatprep.subr.bf16.mxu1 %v4154_v28  ;;  %v4229_v15 = vld [vmem:[#allocation7 + $0x68] ss:$24 sps:$4 sm:$0xff]   ;;  %v4234_v16 = vld [vmem:[#allocation7 + $0x694] ss:$24 sps:$4 sm:$0xff]   ;;  %v4235_v19 = vld [vmem:[#allocation7 + $0x98] ss:$24 sps:$4 sm:$0xff]  }
  0xc4   : > { %2195 = vmatprep.subr.bf16.mxu0 %v4156_v29  ;;  %v4232_v18 = vld [vmem:[#allocation7 + $0x690] ss:$24 sps:$4 sm:$0xff]   ;;  %v4240_v20 = vld [vmem:[#allocation7 + $0x6c4] ss:$24 sps:$4 sm:$0xff]   ;;  %v4238_v22 = vld [vmem:[#allocation7 + $0x6c0] ss:$24 sps:$4 sm:$0xff]  }
  0xc5   : > { %v4243_v21 = vld [vmem:[#allocation7 + $0xcc] ss:$24 sps:$4 sm:$0xff]   ;;  %v4241_v23 = vld [vmem:[#allocation7 + $0xc8] ss:$24 sps:$4 sm:$0xff]   ;;  %v4249_v25 = vld [vmem:[#allocation7 + $0xfc] ss:$24 sps:$4 sm:$0xff]  }
  0xc6   : > { %2153 = vmatpush1.bf16.msra.mxu1 %v4158_v30  ;;  %v4246_v24 = vld [vmem:[#allocation7 + $0x6f4] ss:$24 sps:$4 sm:$0xff]   ;;  %v4244_v26 = vld [vmem:[#allocation7 + $0x6f0] ss:$24 sps:$4 sm:$0xff]   ;;  %v4252_v28 = vld [vmem:[#allocation7 + $0x724] ss:$24 sps:$4 sm:$0xff]  }
  0xc7   : > { %2196 = vmatpush1.bf16.msra.mxu0 %v4159_v31  ;;  %2154 = vmatprep.subr.bf16.mxu1 %v4160_v32  ;;  %v4247_v27 = vld [vmem:[#allocation7 + $0xf8] ss:$24 sps:$4 sm:$0xff]   ;;  %v4255_v29 = vld [vmem:[#allocation7 + $0x12c] ss:$24 sps:$4 sm:$0xff]   ;;  %v4253_v31 = vld [vmem:[#allocation7 + $0x128] ss:$24 sps:$4 sm:$0xff]  }
  0xc8   : > { %2197 = vmatprep.subr.bf16.mxu0 %v4162_v33  ;;  %v4250_v30 = vld [vmem:[#allocation7 + $0x720] ss:$24 sps:$4 sm:$0xff]   ;;  %v4258_v32 = vld [vmem:[#allocation7 + $0x754] ss:$24 sps:$4 sm:$0xff]  }
  0xc9   : > { %v4261_v33 = vld [vmem:[#allocation7 + $0x15c] ss:$24 sps:$4 sm:$0xff]  }
  0xca   : > { %2155 = vmatpush1.bf16.msra.mxu1 %v4164_v34  ;;  %v5094_v34 = vld [vmem:[#allocation4 + $0x14] ss:$24 sps:$4 sm:$0xff]  }
  0xcb   : > { %2198 = vmatpush1.bf16.msra.mxu0 %v4165_v35  ;;  %2156 = vmatprep.subr.bf16.mxu1 %v4166_v36  ;;  %v4256_v35 = vld [vmem:[#allocation7 + $0x750] ss:$24 sps:$4 sm:$0xff]  }
  0xcc   : > { %2199 = vmatprep.subr.bf16.mxu0 %v4168_v37  ;;  %v4259_v36 = vld [vmem:[#allocation7 + $0x158] ss:$24 sps:$4 sm:$0xff]   ;;  %v4264_v37 = vld [vmem:[#allocation7 + $0x784] ss:$24 sps:$4 sm:$0xff]  }
  0xce   : > { %2157 = vmatpush1.bf16.msra.mxu1 %v4170_v38  ;;  %v4267_v38 = vld [vmem:[#allocation7 + $0x18c] ss:$24 sps:$4 sm:$0xff]  }
  0xcf   : > { %2200 = vmatpush1.bf16.msra.mxu0 %v4171_v39  ;;  %2158 = vmatprep.subr.bf16.mxu1 %v4172_v40  ;;  %v4262_v39 = vld [vmem:[#allocation7 + $0x780] ss:$24 sps:$4 sm:$0xff]  }
  0xd0   : > { %2201 = vmatprep.subr.bf16.mxu0 %v4174_v41  ;;  %v4265_v40 = vld [vmem:[#allocation7 + $0x188] ss:$24 sps:$4 sm:$0xff]   ;;  %v4270_v41 = vld [vmem:[#allocation7 + $0x7b4] ss:$24 sps:$4 sm:$0xff]  }
  0xd2   : > { %2159 = vmatpush1.bf16.msra.mxu1 %v4176_v42  ;;  %v4273_v42 = vld [vmem:[#allocation7 + $0x1bc] ss:$24 sps:$4 sm:$0xff]  }
  0xd3   : > { %2202 = vmatpush1.bf16.msra.mxu0 %v4177_v43  ;;  %2160 = vmatprep.subr.bf16.mxu1 %v4178_v44  ;;  %v4268_v43 = vld [vmem:[#allocation7 + $0x7b0] ss:$24 sps:$4 sm:$0xff]  }
  0xd4   : > { %2203 = vmatprep.subr.bf16.mxu0 %v4180_v45  ;;  %v4271_v44 = vld [vmem:[#allocation7 + $0x1b8] ss:$24 sps:$4 sm:$0xff]   ;;  %v4276_v45 = vld [vmem:[#allocation7 + $0x7e4] ss:$24 sps:$4 sm:$0xff]  }
  0xd6   : > { %2161 = vmatpush1.bf16.msra.mxu1 %v4182_v46  ;;  %v4279_v46 = vld [vmem:[#allocation7 + $0x1ec] ss:$24 sps:$4 sm:$0xff]  }
  0xd7   : > { %2204 = vmatpush1.bf16.msra.mxu0 %v4183_v47  ;;  %2162 = vmatprep.subr.bf16.mxu1 %v4184_v50  ;;  %v4274_v47 = vld [vmem:[#allocation7 + $0x7e0] ss:$24 sps:$4 sm:$0xff]  }
  0xd8   : > { %2205 = vmatprep.subr.bf16.mxu0 %v4186_v51  ;;  %v4277_v50 = vld [vmem:[#allocation7 + $0x1e8] ss:$24 sps:$4 sm:$0xff]   ;;  %v4282_v51 = vld [vmem:[#allocation7 + $0x814] ss:$24 sps:$4 sm:$0xff]  }
  0xda   : > { %2163 = vmatpush1.bf16.msra.mxu1 %v4188_v52  ;;  %v4285_v52 = vld [vmem:[#allocation7 + $0x21c] ss:$24 sps:$4 sm:$0xff]  }
  0xdb   : > { %2206 = vmatpush1.bf16.msra.mxu0 %v4189_v53  ;;  %2164 = vmatprep.subr.bf16.mxu1 %v4190_v54  ;;  %v4280_v53 = vld [vmem:[#allocation7 + $0x810] ss:$24 sps:$4 sm:$0xff]  }
  0xdc   : > { %2207 = vmatprep.subr.bf16.mxu0 %v4192_v55  ;;  %v4283_v54 = vld [vmem:[#allocation7 + $0x218] ss:$24 sps:$4 sm:$0xff]   ;;  %v4288_v55 = vld [vmem:[#allocation7 + $0x844] ss:$24 sps:$4 sm:$0xff]  }
  0xde   : > { %2165 = vmatpush1.bf16.msra.mxu1 %v4194_v56  ;;  %v4291_v56 = vld [vmem:[#allocation7 + $0x24c] ss:$24 sps:$4 sm:$0xff]  }
  0xdf   : > { %2208 = vmatpush1.bf16.msra.mxu0 %v4195_v57  ;;  %2166 = vmatprep.subr.bf16.mxu1 %v4196_v58  ;;  %v4286_v57 = vld [vmem:[#allocation7 + $0x840] ss:$24 sps:$4 sm:$0xff]  }
  0xe0   : > { %2209 = vmatprep.subr.bf16.mxu0 %v4198_v59  ;;  %v4289_v58 = vld [vmem:[#allocation7 + $0x248] ss:$24 sps:$4 sm:$0xff]   ;;  %v4294_v59 = vld [vmem:[#allocation7 + $0x874] ss:$24 sps:$4 sm:$0xff]  }
  0xe2   : > { %2167 = vmatpush1.bf16.msra.mxu1 %v4200_v60  ;;  %v4297_v60 = vld [vmem:[#allocation7 + $0x27c] ss:$24 sps:$4 sm:$0xff]  }
  0xe3   : > { %2210 = vmatpush1.bf16.msra.mxu0 %v4201_v61  ;;  %2168 = vmatprep.subr.bf16.mxu1 %v4202_v62  ;;  %v4292_v61 = vld [vmem:[#allocation7 + $0x870] ss:$24 sps:$4 sm:$0xff]  }
  0xe4   : > { %2211 = vmatprep.subr.bf16.mxu0 %v4204_v63  ;;  %v4295_v62 = vld [vmem:[#allocation7 + $0x278] ss:$24 sps:$4 sm:$0xff]   ;;  %v4300_v63 = vld [vmem:[#allocation7 + $0x8a4] ss:$24 sps:$4 sm:$0xff]  }
  0xe6   : > { %2169 = vmatpush1.bf16.msra.mxu1 %v4206_v0  ;;  %v4303_v0 = vld [vmem:[#allocation7 + $0x2ac] ss:$24 sps:$4 sm:$0xff]  }
  0xe7   : > { %2212 = vmatpush1.bf16.msra.mxu0 %v4207_v1  ;;  %2267 = vmatprep.subr.bf16.mxu1 %v4217_v3  ;;  %v4298_v1 = vld [vmem:[#allocation7 + $0x8a0] ss:$24 sps:$4 sm:$0xff]   ;;  %v4306_v3 = vld [vmem:[#allocation7 + $0x8d4] ss:$24 sps:$4 sm:$0xff]  }
  0xe8   : > { %2224 = vmatprep.subr.bf16.mxu0 %v4214_v2  ;;  %v4301_v2 = vld [vmem:[#allocation7 + $0x2a8] ss:$24 sps:$4 sm:$0xff]  }
  0xe9   : > { %2171 = vmatmul.mubr.bf16.vlgmr.msra.gmra.mrb[0].mxu1 %v5087_v6 }
  0xea   : > { %2214 = vmatmul.mubr.bf16.vlgmr.msra.gmra.mrb[0].mxu0 %v5089_v7  ;;  %2268 = vmatpush1.bf16.msra.mxu1 %v4215_v5  ;;  %v4304_v5 = vld [vmem:[#allocation7 + $0x8d0] ss:$24 sps:$4 sm:$0xff]  }
  0xeb   : > { %2225 = vmatpush1.bf16.msra.mxu0 %v4212_v4  ;;  %2269 = vmatprep.subr.bf16.mxu1 %v4225_v9  ;;  %v4309_v4 = vld [vmem:[#allocation7 + $0x2dc] ss:$24 sps:$4 sm:$0xff]   ;;  %v4315_v9 = vld [vmem:[#allocation7 + $0x30c] ss:$24 sps:$4 sm:$0xff]  }
  0xec   : > { %2226 = vmatprep.subr.bf16.mxu0 %v4222_v8  ;;  %2299 = vmatprep.mubr.bf16.mxu1 %v5081_v48  ;;  %v4307_v8 = vld [vmem:[#allocation7 + $0x2d8] ss:$24 sps:$4 sm:$0xff]  }
  0xed   : > { %2256 = vmatprep.mubr.bf16.mxu0 %v5094_v34 }
  0xee   : > { %2270 = vmatpush1.bf16.msra.mxu1 %v4223_v11  ;;  %v5097_v11 = vld [vmem:[#allocation4 + $0x10] ss:$24 sps:$4 sm:$0xff]  }
  0xef   : > { %2227 = vmatpush1.bf16.msra.mxu0 %v4220_v10  ;;  %2271 = vmatprep.subr.bf16.mxu1 %v4231_v13  ;;  %v4318_v10 = vld [vmem:[#allocation7 + $0x14] ss:$24 sps:$4 sm:$0xff]   ;;  %v4316_v13 = vld [vmem:[#allocation7 + $0x10] ss:$24 sps:$4 sm:$0xff]  }
  0xf0   : > { %2228 = vmatprep.subr.bf16.mxu0 %v4228_v12  ;;  %v4313_v12 = vld [vmem:[#allocation7 + $0x308] ss:$24 sps:$4 sm:$0xff]  }
  0xf2   : > { %2272 = vmatpush1.bf16.msra.mxu1 %v4229_v15  ;;  %v4324_v15 = vld [vmem:[#allocation7 + $0x44] ss:$24 sps:$4 sm:$0xff]  }
  0xf3   : > { %2229 = vmatpush1.bf16.msra.mxu0 %v4226_v14  ;;  %2273 = vmatprep.subr.bf16.mxu1 %v4237_v17  ;;  %v4321_v14 = vld [vmem:[#allocation7 + $0x33c] ss:$24 sps:$4 sm:$0xff]   ;;  %v4322_v17 = vld [vmem:[#allocation7 + $0x40] ss:$24 sps:$4 sm:$0xff]  }
  0xf4   : > { %2230 = vmatprep.subr.bf16.mxu0 %v4234_v16  ;;  %v4319_v16 = vld [vmem:[#allocation7 + $0x338] ss:$24 sps:$4 sm:$0xff]  }
  0xf6   : > { %2274 = vmatpush1.bf16.msra.mxu1 %v4235_v19  ;;  %v4330_v19 = vld [vmem:[#allocation7 + $0x74] ss:$24 sps:$4 sm:$0xff]  }
  0xf7   : > { %2231 = vmatpush1.bf16.msra.mxu0 %v4232_v18  ;;  %2275 = vmatprep.subr.bf16.mxu1 %v4243_v21  ;;  %v4327_v18 = vld [vmem:[#allocation7 + $0x36c] ss:$24 sps:$4 sm:$0xff]   ;;  %v4328_v21 = vld [vmem:[#allocation7 + $0x70] ss:$24 sps:$4 sm:$0xff]  }
  0xf8   : > { %2232 = vmatprep.subr.bf16.mxu0 %v4240_v20  ;;  %v4325_v20 = vld [vmem:[#allocation7 + $0x368] ss:$24 sps:$4 sm:$0xff]  }
  0xfa   : > { %2276 = vmatpush1.bf16.msra.mxu1 %v4241_v23  ;;  %v4336_v23 = vld [vmem:[#allocation7 + $0xa4] ss:$24 sps:$4 sm:$0xff]  }
  0xfb   : > { %2233 = vmatpush1.bf16.msra.mxu0 %v4238_v22  ;;  %2277 = vmatprep.subr.bf16.mxu1 %v4249_v25  ;;  %v4333_v22 = vld [vmem:[#allocation7 + $0x39c] ss:$24 sps:$4 sm:$0xff]   ;;  %v4334_v25 = vld [vmem:[#allocation7 + $0xa0] ss:$24 sps:$4 sm:$0xff]  }
  0xfc   : > { %2234 = vmatprep.subr.bf16.mxu0 %v4246_v24  ;;  %v4331_v24 = vld [vmem:[#allocation7 + $0x398] ss:$24 sps:$4 sm:$0xff]  }
  0xfe   : > { %2278 = vmatpush1.bf16.msra.mxu1 %v4247_v27  ;;  %v4342_v27 = vld [vmem:[#allocation7 + $0xd4] ss:$24 sps:$4 sm:$0xff]  }
  0xff   : > { %2235 = vmatpush1.bf16.msra.mxu0 %v4244_v26  ;;  %2279 = vmatprep.subr.bf16.mxu1 %v4255_v29  ;;  %v4339_v26 = vld [vmem:[#allocation7 + $0x3cc] ss:$24 sps:$4 sm:$0xff]  }
 0x100   : > { %2236 = vmatprep.subr.bf16.mxu0 %v4252_v28  ;;  %v4337_v28 = vld [vmem:[#allocation7 + $0x3c8] ss:$24 sps:$4 sm:$0xff]   ;;  %v4348_v29 = vld [vmem:[#allocation7 + $0x104] ss:$24 sps:$4 sm:$0xff]  }
 0x102   : > { %2280 = vmatpush1.bf16.msra.mxu1 %v4253_v31  ;;  %v4346_v31 = vld [vmem:[#allocation7 + $0x100] ss:$24 sps:$4 sm:$0xff]  }
 0x103   : > { %2237 = vmatpush1.bf16.msra.mxu0 %v4250_v30  ;;  %2281 = vmatprep.subr.bf16.mxu1 %v4261_v33  ;;  %v4343_v30 = vld [vmem:[#allocation7 + $0x3f8] ss:$24 sps:$4 sm:$0xff]   ;;  %v4354_v33 = vld [vmem:[#allocation7 + $0x134] ss:$24 sps:$4 sm:$0xff]  }
 0x104   : > { %2238 = vmatprep.subr.bf16.mxu0 %v4258_v32  ;;  %v4351_v32 = vld [vmem:[#allocation7 + $0x42c] ss:$24 sps:$4 sm:$0xff]  }
 0x106   : > { %2282 = vmatpush1.bf16.msra.mxu1 %v4259_v36  ;;  %v4352_v36 = vld [vmem:[#allocation7 + $0x130] ss:$24 sps:$4 sm:$0xff]  }
 0x107   : > { %2239 = vmatpush1.bf16.msra.mxu0 %v4256_v35  ;;  %2283 = vmatprep.subr.bf16.mxu1 %v4267_v38  ;;  %v4349_v35 = vld [vmem:[#allocation7 + $0x428] ss:$24 sps:$4 sm:$0xff]   ;;  %v4360_v38 = vld [vmem:[#allocation7 + $0x164] ss:$24 sps:$4 sm:$0xff]  }
 0x108   : > { %2240 = vmatprep.subr.bf16.mxu0 %v4264_v37  ;;  %v4357_v37 = vld [vmem:[#allocation7 + $0x45c] ss:$24 sps:$4 sm:$0xff]  }
 0x10a   : > { %2284 = vmatpush1.bf16.msra.mxu1 %v4265_v40  ;;  %v4358_v40 = vld [vmem:[#allocation7 + $0x160] ss:$24 sps:$4 sm:$0xff]  }
 0x10b   : > { %2241 = vmatpush1.bf16.msra.mxu0 %v4262_v39  ;;  %2285 = vmatprep.subr.bf16.mxu1 %v4273_v42  ;;  %v4355_v39 = vld [vmem:[#allocation7 + $0x458] ss:$24 sps:$4 sm:$0xff]   ;;  %v4366_v42 = vld [vmem:[#allocation7 + $0x194] ss:$24 sps:$4 sm:$0xff]  }
 0x10c   : > { %2242 = vmatprep.subr.bf16.mxu0 %v4270_v41  ;;  %v4363_v41 = vld [vmem:[#allocation7 + $0x48c] ss:$24 sps:$4 sm:$0xff]  }
 0x10e   : > { %2286 = vmatpush1.bf16.msra.mxu1 %v4271_v44  ;;  %v4364_v44 = vld [vmem:[#allocation7 + $0x190] ss:$24 sps:$4 sm:$0xff]  }
 0x10f   : > { %2243 = vmatpush1.bf16.msra.mxu0 %v4268_v43  ;;  %2287 = vmatprep.subr.bf16.mxu1 %v4279_v46  ;;  %v4361_v43 = vld [vmem:[#allocation7 + $0x488] ss:$24 sps:$4 sm:$0xff]   ;;  %v4372_v46 = vld [vmem:[#allocation7 + $0x1c4] ss:$24 sps:$4 sm:$0xff]  }
 0x110   : > { %2244 = vmatprep.subr.bf16.mxu0 %v4276_v45  ;;  %v4369_v45 = vld [vmem:[#allocation7 + $0x4bc] ss:$24 sps:$4 sm:$0xff]  }
 0x112   : > { %2288 = vmatpush1.bf16.msra.mxu1 %v4277_v50  ;;  %v4370_v50 = vld [vmem:[#allocation7 + $0x1c0] ss:$24 sps:$4 sm:$0xff]  }
 0x113   : > { %2245 = vmatpush1.bf16.msra.mxu0 %v4274_v47  ;;  %2289 = vmatprep.subr.bf16.mxu1 %v4285_v52  ;;  %v4367_v47 = vld [vmem:[#allocation7 + $0x4b8] ss:$24 sps:$4 sm:$0xff]   ;;  %v4378_v52 = vld [vmem:[#allocation7 + $0x1f4] ss:$24 sps:$4 sm:$0xff]  }
 0x114   : > { %2246 = vmatprep.subr.bf16.mxu0 %v4282_v51  ;;  %v4375_v51 = vld [vmem:[#allocation7 + $0x4ec] ss:$24 sps:$4 sm:$0xff]  }
 0x116   : > { %2290 = vmatpush1.bf16.msra.mxu1 %v4283_v54  ;;  %v4376_v54 = vld [vmem:[#allocation7 + $0x1f0] ss:$24 sps:$4 sm:$0xff]  }
 0x117   : > { %2247 = vmatpush1.bf16.msra.mxu0 %v4280_v53  ;;  %2291 = vmatprep.subr.bf16.mxu1 %v4291_v56  ;;  %v4373_v53 = vld [vmem:[#allocation7 + $0x4e8] ss:$24 sps:$4 sm:$0xff]   ;;  %v4384_v56 = vld [vmem:[#allocation7 + $0x224] ss:$24 sps:$4 sm:$0xff]  }
 0x118   : > { %2248 = vmatprep.subr.bf16.mxu0 %v4288_v55  ;;  %v4381_v55 = vld [vmem:[#allocation7 + $0x51c] ss:$24 sps:$4 sm:$0xff]  }
 0x11a   : > { %2292 = vmatpush1.bf16.msra.mxu1 %v4289_v58  ;;  %v4382_v58 = vld [vmem:[#allocation7 + $0x220] ss:$24 sps:$4 sm:$0xff]  }
 0x11b   : > { %2249 = vmatpush1.bf16.msra.mxu0 %v4286_v57  ;;  %2293 = vmatprep.subr.bf16.mxu1 %v4297_v60  ;;  %v4379_v57 = vld [vmem:[#allocation7 + $0x518] ss:$24 sps:$4 sm:$0xff]   ;;  %v4390_v60 = vld [vmem:[#allocation7 + $0x254] ss:$24 sps:$4 sm:$0xff]  }
 0x11c   : > { %2250 = vmatprep.subr.bf16.mxu0 %v4294_v59  ;;  %v4387_v59 = vld [vmem:[#allocation7 + $0x54c] ss:$24 sps:$4 sm:$0xff]  }
 0x11e   : > { %2294 = vmatpush1.bf16.msra.mxu1 %v4295_v62  ;;  %v4388_v62 = vld [vmem:[#allocation7 + $0x250] ss:$24 sps:$4 sm:$0xff]  }
 0x11f   : > { %2251 = vmatpush1.bf16.msra.mxu0 %v4292_v61  ;;  %2295 = vmatprep.subr.bf16.mxu1 %v4303_v0  ;;  %v4385_v61 = vld [vmem:[#allocation7 + $0x548] ss:$24 sps:$4 sm:$0xff]   ;;  %v4396_v0 = vld [vmem:[#allocation7 + $0x284] ss:$24 sps:$4 sm:$0xff]  }
 0x120   : > { %2252 = vmatprep.subr.bf16.mxu0 %v4300_v63  ;;  %v4393_v63 = vld [vmem:[#allocation7 + $0x57c] ss:$24 sps:$4 sm:$0xff]  }
 0x122   : > { %2296 = vmatpush1.bf16.msra.mxu1 %v4301_v2  ;;  %v4394_v2 = vld [vmem:[#allocation7 + $0x280] ss:$24 sps:$4 sm:$0xff]  }
 0x123   : > { %2253 = vmatpush1.bf16.msra.mxu0 %v4298_v1  ;;  %2297 = vmatprep.subr.bf16.mxu1 %v4309_v4  ;;  %v4391_v1 = vld [vmem:[#allocation7 + $0x578] ss:$24 sps:$4 sm:$0xff]   ;;  %v4402_v4 = vld [vmem:[#allocation7 + $0x2b4] ss:$24 sps:$4 sm:$0xff]  }
 0x124   : > { %2254 = vmatprep.subr.bf16.mxu0 %v4306_v3  ;;  %v4399_v3 = vld [vmem:[#allocation7 + $0x5ac] ss:$24 sps:$4 sm:$0xff]  }
 0x126   : > { %2298 = vmatpush1.bf16.msra.mxu1 %v4307_v8  ;;  %v4400_v8 = vld [vmem:[#allocation7 + $0x2b0] ss:$24 sps:$4 sm:$0xff]  }
 0x127   : > { %2255 = vmatpush1.bf16.msra.mxu0 %v4304_v5  ;;  %2310 = vmatprep.subr.bf16.mxu1 %v4315_v9  ;;  %v4397_v5 = vld [vmem:[#allocation7 + $0x5a8] ss:$24 sps:$4 sm:$0xff]   ;;  %v4405_v9 = vld [vmem:[#allocation7 + $0x5dc] ss:$24 sps:$4 sm:$0xff]  }
 0x128   : > { %2396 = vmatprep.subr.bf16.mxu0 %v4318_v10  ;;  %v4408_v10 = vld [vmem:[#allocation7 + $0x2e4] ss:$24 sps:$4 sm:$0xff]  }
 0x129   : > { %2300 = vmatmul.mubr.bf16.vlgmr.msra.gmra.mrb[4].mxu1 %v5087_v6 }
 0x12a   : > { %2257 = vmatmul.mubr.bf16.vlgmr.msra.gmra.mrb[0].mxu0 %v5097_v11  ;;  %2311 = vmatpush1.bf16.msra.mxu1 %v4313_v12  ;;  %v4403_v12 = vld [vmem:[#allocation7 + $0x5d8] ss:$24 sps:$4 sm:$0xff]  }
 0x12b   : > { %2397 = vmatpush1.bf16.msra.mxu0 %v4316_v13  ;;  %2312 = vmatprep.subr.bf16.mxu1 %v4321_v14  ;;  %v4406_v13 = vld [vmem:[#allocation7 + $0x2e0] ss:$24 sps:$4 sm:$0xff]   ;;  %v4411_v14 = vld [vmem:[#allocation7 + $0x60c] ss:$24 sps:$4 sm:$0xff]  }
 0x12c   : > { %2398 = vmatprep.subr.bf16.mxu0 %v4324_v15  ;;  %2342 = vmatprep.mubr.bf16.mxu1 %v5083_v49  ;;  %v4340_v49 = vld [vmem:[#allocation7 + $0xd0] ss:$24 sps:$4 sm:$0xff]   ;;  %v4414_v15 = vld [vmem:[#allocation7 + $0x314] ss:$24 sps:$4 sm:$0xff]  }
 0x12d   : > { %2428 = vmatprep.mubr.bf16.mxu0 %v5081_v48  ;;  %v4345_v48 = vld [vmem:[#allocation7 + $0x3fc] ss:$24 sps:$4 sm:$0xff]  }
 0x12e   : > { %2313 = vmatpush1.bf16.msra.mxu1 %v4319_v16  ;;  %v4409_v16 = vld [vmem:[#allocation7 + $0x608] ss:$24 sps:$4 sm:$0xff]  }
 0x12f   : > { %2399 = vmatpush1.bf16.msra.mxu0 %v4322_v17  ;;  %2314 = vmatprep.subr.bf16.mxu1 %v4327_v18  ;;  %v4412_v17 = vld [vmem:[#allocation7 + $0x310] ss:$24 sps:$4 sm:$0xff]   ;;  %v4417_v18 = vld [vmem:[#allocation7 + $0x63c] ss:$24 sps:$4 sm:$0xff]  }
 0x130   : > { %2400 = vmatprep.subr.bf16.mxu0 %v4330_v19  ;;  %v4420_v19 = vld [vmem:[#allocation7 + $0x344] ss:$24 sps:$4 sm:$0xff]  }
 0x132   : > { %2315 = vmatpush1.bf16.msra.mxu1 %v4325_v20  ;;  %v4415_v20 = vld [vmem:[#allocation7 + $0x638] ss:$24 sps:$4 sm:$0xff]  }
 0x133   : > { %2401 = vmatpush1.bf16.msra.mxu0 %v4328_v21  ;;  %2316 = vmatprep.subr.bf16.mxu1 %v4333_v22  ;;  %v4418_v21 = vld [vmem:[#allocation7 + $0x340] ss:$24 sps:$4 sm:$0xff]   ;;  %v4423_v22 = vld [vmem:[#allocation7 + $0x66c] ss:$24 sps:$4 sm:$0xff]  }
 0x134   : > { %2402 = vmatprep.subr.bf16.mxu0 %v4336_v23  ;;  %v4426_v23 = vld [vmem:[#allocation7 + $0x374] ss:$24 sps:$4 sm:$0xff]  }
 0x136   : > { %2317 = vmatpush1.bf16.msra.mxu1 %v4331_v24  ;;  %v4553_v24 = vld [vmem:[#allocation4 + $0xc] ss:$24 sps:$4 sm:$0xff]  }
 0x137   : > { %2403 = vmatpush1.bf16.msra.mxu0 %v4334_v25  ;;  %2318 = vmatprep.subr.bf16.mxu1 %v4339_v26  ;;  %v4421_v25 = vld [vmem:[#allocation7 + $0x668] ss:$24 sps:$4 sm:$0xff]  }
 0x138   : > { %2404 = vmatprep.subr.bf16.mxu0 %v4342_v27  ;;  %v4424_v26 = vld [vmem:[#allocation7 + $0x370] ss:$24 sps:$4 sm:$0xff]  }
 0x139   : > { %v4427_v27 = vld [vmem:[#allocation7 + $0x698] ss:$24 sps:$4 sm:$0xff]  }
 0x13a   : > { %2319 = vmatpush1.bf16.msra.mxu1 %v4337_v28  ;;  %v4430_v28 = vld [vmem:[#allocation7 + $0x3a0] ss:$24 sps:$4 sm:$0xff]  }
 0x13b   : > { %2405 = vmatpush1.bf16.msra.mxu0 %v4340_v49  ;;  %2320 = vmatprep.subr.bf16.mxu1 %v4345_v48  ;;  %v4435_v49 = vld [vmem:[#allocation7 + $0x6cc] ss:$24 sps:$4 sm:$0xff]  }
 0x13c   : > { %2406 = vmatprep.subr.bf16.mxu0 %v4348_v29  ;;  %v4438_v48 = vld [vmem:[#allocation7 + $0x3d4] ss:$24 sps:$4 sm:$0xff]   ;;  %v4433_v29 = vld [vmem:[#allocation7 + $0x6c8] ss:$24 sps:$4 sm:$0xff]  }
 0x13e   : > { %2321 = vmatpush1.bf16.msra.mxu1 %v4343_v30  ;;  %v4436_v30 = vld [vmem:[#allocation7 + $0x3d0] ss:$24 sps:$4 sm:$0xff]  }
 0x13f   : > { %2407 = vmatpush1.bf16.msra.mxu0 %v4346_v31  ;;  %2322 = vmatprep.subr.bf16.mxu1 %v4351_v32  ;;  %v4441_v31 = vld [vmem:[#allocation7 + $0x6fc] ss:$24 sps:$4 sm:$0xff]  }
 0x140   : > { %2408 = vmatprep.subr.bf16.mxu0 %v4354_v33  ;;  %v4444_v32 = vld [vmem:[#allocation7 + $0x404] ss:$24 sps:$4 sm:$0xff]   ;;  %v4439_v33 = vld [vmem:[#allocation7 + $0x6f8] ss:$24 sps:$4 sm:$0xff]  }
 0x142   : > { %2323 = vmatpush1.bf16.msra.mxu1 %v4349_v35  ;;  %v4442_v35 = vld [vmem:[#allocation7 + $0x400] ss:$24 sps:$4 sm:$0xff]  }
 0x143   : > { %2409 = vmatpush1.bf16.msra.mxu0 %v4352_v36  ;;  %2324 = vmatprep.subr.bf16.mxu1 %v4357_v37  ;;  %v4447_v36 = vld [vmem:[#allocation7 + $0x72c] ss:$24 sps:$4 sm:$0xff]  }
 0x144   : > { %2410 = vmatprep.subr.bf16.mxu0 %v4360_v38  ;;  %v4450_v37 = vld [vmem:[#allocation7 + $0x434] ss:$24 sps:$4 sm:$0xff]   ;;  %v4445_v38 = vld [vmem:[#allocation7 + $0x728] ss:$24 sps:$4 sm:$0xff]  }
 0x146   : > { %2325 = vmatpush1.bf16.msra.mxu1 %v4355_v39  ;;  %v4448_v39 = vld [vmem:[#allocation7 + $0x430] ss:$24 sps:$4 sm:$0xff]  }
 0x147   : > { %2411 = vmatpush1.bf16.msra.mxu0 %v4358_v40  ;;  %2326 = vmatprep.subr.bf16.mxu1 %v4363_v41  ;;  %v4453_v40 = vld [vmem:[#allocation7 + $0x75c] ss:$24 sps:$4 sm:$0xff]  }
 0x148   : > { %2412 = vmatprep.subr.bf16.mxu0 %v4366_v42  ;;  %v4456_v41 = vld [vmem:[#allocation7 + $0x464] ss:$24 sps:$4 sm:$0xff]   ;;  %v4451_v42 = vld [vmem:[#allocation7 + $0x758] ss:$24 sps:$4 sm:$0xff]  }
 0x14a   : > { %2327 = vmatpush1.bf16.msra.mxu1 %v4361_v43  ;;  %v4454_v43 = vld [vmem:[#allocation7 + $0x460] ss:$24 sps:$4 sm:$0xff]  }
 0x14b   : > { %2413 = vmatpush1.bf16.msra.mxu0 %v4364_v44  ;;  %2328 = vmatprep.subr.bf16.mxu1 %v4369_v45  ;;  %v4459_v44 = vld [vmem:[#allocation7 + $0x78c] ss:$24 sps:$4 sm:$0xff]  }
 0x14c   : > { %2414 = vmatprep.subr.bf16.mxu0 %v4372_v46  ;;  %v4462_v45 = vld [vmem:[#allocation7 + $0x494] ss:$24 sps:$4 sm:$0xff]   ;;  %v4457_v46 = vld [vmem:[#allocation7 + $0x788] ss:$24 sps:$4 sm:$0xff]  }
 0x14e   : > { %2329 = vmatpush1.bf16.msra.mxu1 %v4367_v47  ;;  %v4460_v47 = vld [vmem:[#allocation7 + $0x490] ss:$24 sps:$4 sm:$0xff]  }
 0x14f   : > { %2415 = vmatpush1.bf16.msra.mxu0 %v4370_v50  ;;  %2330 = vmatprep.subr.bf16.mxu1 %v4375_v51  ;;  %v4465_v50 = vld [vmem:[#allocation7 + $0x7bc] ss:$24 sps:$4 sm:$0xff]  }
 0x150   : > { %2416 = vmatprep.subr.bf16.mxu0 %v4378_v52  ;;  %v4468_v51 = vld [vmem:[#allocation7 + $0x4c4] ss:$24 sps:$4 sm:$0xff]   ;;  %v4463_v52 = vld [vmem:[#allocation7 + $0x7b8] ss:$24 sps:$4 sm:$0xff]  }
 0x152   : > { %2331 = vmatpush1.bf16.msra.mxu1 %v4373_v53  ;;  %v4466_v53 = vld [vmem:[#allocation7 + $0x4c0] ss:$24 sps:$4 sm:$0xff]  }
 0x153   : > { %2417 = vmatpush1.bf16.msra.mxu0 %v4376_v54  ;;  %2332 = vmatprep.subr.bf16.mxu1 %v4381_v55  ;;  %v4471_v54 = vld [vmem:[#allocation7 + $0x7ec] ss:$24 sps:$4 sm:$0xff]  }
 0x154   : > { %2418 = vmatprep.subr.bf16.mxu0 %v4384_v56  ;;  %v4474_v55 = vld [vmem:[#allocation7 + $0x4f4] ss:$24 sps:$4 sm:$0xff]   ;;  %v4469_v56 = vld [vmem:[#allocation7 + $0x7e8] ss:$24 sps:$4 sm:$0xff]  }
 0x156   : > { %2333 = vmatpush1.bf16.msra.mxu1 %v4379_v57  ;;  %v4472_v57 = vld [vmem:[#allocation7 + $0x4f0] ss:$24 sps:$4 sm:$0xff]  }
 0x157   : > { %2419 = vmatpush1.bf16.msra.mxu0 %v4382_v58  ;;  %2334 = vmatprep.subr.bf16.mxu1 %v4387_v59  ;;  %v4477_v58 = vld [vmem:[#allocation7 + $0x81c] ss:$24 sps:$4 sm:$0xff]  }
 0x158   : > { %2420 = vmatprep.subr.bf16.mxu0 %v4390_v60  ;;  %v4480_v59 = vld [vmem:[#allocation7 + $0x524] ss:$24 sps:$4 sm:$0xff]   ;;  %v4475_v60 = vld [vmem:[#allocation7 + $0x818] ss:$24 sps:$4 sm:$0xff]  }
 0x15a   : > { %2335 = vmatpush1.bf16.msra.mxu1 %v4385_v61  ;;  %v4478_v61 = vld [vmem:[#allocation7 + $0x520] ss:$24 sps:$4 sm:$0xff]  }
 0x15b   : > { %2421 = vmatpush1.bf16.msra.mxu0 %v4388_v62  ;;  %2336 = vmatprep.subr.bf16.mxu1 %v4393_v63  ;;  %v4483_v62 = vld [vmem:[#allocation7 + $0x84c] ss:$24 sps:$4 sm:$0xff]  }
 0x15c   : > { %2422 = vmatprep.subr.bf16.mxu0 %v4396_v0  ;;  %v4486_v63 = vld [vmem:[#allocation7 + $0x554] ss:$24 sps:$4 sm:$0xff]   ;;  %v4481_v0 = vld [vmem:[#allocation7 + $0x848] ss:$24 sps:$4 sm:$0xff]  }
 0x15e   : > { %2337 = vmatpush1.bf16.msra.mxu1 %v4391_v1  ;;  %v4484_v1 = vld [vmem:[#allocation7 + $0x550] ss:$24 sps:$4 sm:$0xff]  }
 0x15f   : > { %2423 = vmatpush1.bf16.msra.mxu0 %v4394_v2  ;;  %2338 = vmatprep.subr.bf16.mxu1 %v4399_v3  ;;  %v4489_v2 = vld [vmem:[#allocation7 + $0x87c] ss:$24 sps:$4 sm:$0xff]  }
 0x160   : > { %2424 = vmatprep.subr.bf16.mxu0 %v4402_v4  ;;  %v4492_v3 = vld [vmem:[#allocation7 + $0x584] ss:$24 sps:$4 sm:$0xff]   ;;  %v4487_v4 = vld [vmem:[#allocation7 + $0x878] ss:$24 sps:$4 sm:$0xff]  }
 0x162   : > { %2339 = vmatpush1.bf16.msra.mxu1 %v4397_v5  ;;  %v4490_v5 = vld [vmem:[#allocation7 + $0x580] ss:$24 sps:$4 sm:$0xff]  }
 0x163   : > { %2425 = vmatpush1.bf16.msra.mxu0 %v4400_v8  ;;  %2340 = vmatprep.subr.bf16.mxu1 %v4405_v9  ;;  %v4495_v8 = vld [vmem:[#allocation7 + $0x8ac] ss:$24 sps:$4 sm:$0xff]  }
 0x164   : > { %2426 = vmatprep.subr.bf16.mxu0 %v4408_v10  ;;  %v4498_v9 = vld [vmem:[#allocation7 + $0x5b4] ss:$24 sps:$4 sm:$0xff]   ;;  %v4493_v10 = vld [vmem:[#allocation7 + $0x8a8] ss:$24 sps:$4 sm:$0xff]  }
 0x166   : > { %2341 = vmatpush1.bf16.msra.mxu1 %v4403_v12  ;;  %v4496_v12 = vld [vmem:[#allocation7 + $0x5b0] ss:$24 sps:$4 sm:$0xff]  }
 0x167   : > { %2427 = vmatpush1.bf16.msra.mxu0 %v4406_v13  ;;  %2353 = vmatprep.subr.bf16.mxu1 %v4411_v14  ;;  %v4501_v13 = vld [vmem:[#allocation7 + $0x8dc] ss:$24 sps:$4 sm:$0xff]  }
 0x168   : > { %2439 = vmatprep.subr.bf16.mxu0 %v4414_v15  ;;  %v4504_v14 = vld [vmem:[#allocation7 + $0x5e4] ss:$24 sps:$4 sm:$0xff]   ;;  %v4499_v15 = vld [vmem:[#allocation7 + $0x8d8] ss:$24 sps:$4 sm:$0xff]  }
 0x169   : > { %2343 = vmatmul.mubr.bf16.vlgmr.msra.gmra.mrb[4].mxu1 %v5089_v7  ;;  %v4429_v7 = vld [vmem:[#allocation7 + $0x69c] ss:$24 sps:$4 sm:$0xff]  }
 0x16a   : > { %2429 = vmatmul.mubr.bf16.vlgmr.msra.gmra.mrb[4].mxu0 %v5087_v6  ;;  %2354 = vmatpush1.bf16.msra.mxu1 %v4409_v16  ;;  %v4432_v6 = vld [vmem:[#allocation7 + $0x3a4] ss:$24 sps:$4 sm:$0xff]   ;;  %v4502_v16 = vld [vmem:[#allocation7 + $0x5e0] ss:$24 sps:$4 sm:$0xff]  }
 0x16b   : > { %2440 = vmatpush1.bf16.msra.mxu0 %v4412_v17  ;;  %2355 = vmatprep.subr.bf16.mxu1 %v4417_v18  ;;  %v4507_v17 = vld [vmem:[#allocation7 + $0x614] ss:$24 sps:$4 sm:$0xff]   ;;  %v4505_v18 = vld [vmem:[#allocation7 + $0x610] ss:$24 sps:$4 sm:$0xff]  }
 0x16c   : > { %2441 = vmatprep.subr.bf16.mxu0 %v4420_v19  ;;  %2385 = vmatprep.mubr.bf16.mxu1 %v5094_v34  ;;  %v4510_v19 = vld [vmem:[#allocation7 + $0x644] ss:$24 sps:$4 sm:$0xff]  }
 0x16d   : > { %2471 = vmatprep.mubr.bf16.mxu0 %v4553_v24  ;;  %v4516_v24 = vld [vmem:[#allocation7 + $0x6a4] ss:$24 sps:$4 sm:$0xff]  }
 0x16e   : > { %2356 = vmatpush1.bf16.msra.mxu1 %v4415_v20  ;;  %v4554_v20 = vld [vmem:[#allocation4 + $0x8] ss:$24 sps:$4 sm:$0xff]  }
 0x16f   : > { %2442 = vmatpush1.bf16.msra.mxu0 %v4418_v21  ;;  %2357 = vmatprep.subr.bf16.mxu1 %v4423_v22  ;;  %v4508_v21 = vld [vmem:[#allocation7 + $0x640] ss:$24 sps:$4 sm:$0xff]   ;;  %v4513_v22 = vld [vmem:[#allocation7 + $0x674] ss:$24 sps:$4 sm:$0xff]  }
 0x170   : > { %2443 = vmatprep.subr.bf16.mxu0 %v4426_v23  ;;  %v4511_v23 = vld [vmem:[#allocation7 + $0x670] ss:$24 sps:$4 sm:$0xff]  }
 0x172   : > { %2358 = vmatpush1.bf16.msra.mxu1 %v4421_v25  ;;  %v4514_v25 = vld [vmem:[#allocation7 + $0x6a0] ss:$24 sps:$4 sm:$0xff]  }
 0x173   : > { %2444 = vmatpush1.bf16.msra.mxu0 %v4424_v26  ;;  %2359 = vmatprep.subr.bf16.mxu1 %v4429_v7  ;;  %v4519_v26 = vld [vmem:[#allocation7 + $0x6d4] ss:$24 sps:$4 sm:$0xff]   ;;  %v4517_v7 = vld [vmem:[#allocation7 + $0x6d0] ss:$24 sps:$4 sm:$0xff]  }
 0x174   : > { %2445 = vmatprep.subr.bf16.mxu0 %v4432_v6  ;;  %v4522_v6 = vld [vmem:[#allocation7 + $0x704] ss:$24 sps:$4 sm:$0xff]  }
 0x176   : > { %2360 = vmatpush1.bf16.msra.mxu1 %v4427_v27  ;;  %v4520_v27 = vld [vmem:[#allocation7 + $0x700] ss:$24 sps:$4 sm:$0xff]  }
 0x177   : > { %2446 = vmatpush1.bf16.msra.mxu0 %v4430_v28  ;;  %2361 = vmatprep.subr.bf16.mxu1 %v4435_v49  ;;  %v4525_v28 = vld [vmem:[#allocation7 + $0x734] ss:$24 sps:$4 sm:$0xff]  }
 0x178   : > { %2447 = vmatprep.subr.bf16.mxu0 %v4438_v48  ;;  %v4523_v48 = vld [vmem:[#allocation7 + $0x730] ss:$24 sps:$4 sm:$0xff]  }
 0x17a   : > { %2362 = vmatpush1.bf16.msra.mxu1 %v4433_v29 }
 0x17b   : > { %2448 = vmatpush1.bf16.msra.mxu0 %v4436_v30  ;;  %2363 = vmatprep.subr.bf16.mxu1 %v4441_v31  ;;  %v4528_v30 = vld [vmem:[#allocation7 + $0x764] ss:$24 sps:$4 sm:$0xff]  }
 0x17c   : > { %2449 = vmatprep.subr.bf16.mxu0 %v4444_v32  ;;  %v4526_v32 = vld [vmem:[#allocation7 + $0x760] ss:$24 sps:$4 sm:$0xff]  }
 0x17e   : > { %2364 = vmatpush1.bf16.msra.mxu1 %v4439_v33  ;;  %v4531_v33 = vld [vmem:[#allocation7 + $0x794] ss:$24 sps:$4 sm:$0xff]  }
 0x17f   : > { %2450 = vmatpush1.bf16.msra.mxu0 %v4442_v35  ;;  %2365 = vmatprep.subr.bf16.mxu1 %v4447_v36  ;;  %v4529_v35 = vld [vmem:[#allocation7 + $0x790] ss:$24 sps:$4 sm:$0xff]   ;;  %v4534_v36 = vld [vmem:[#allocation7 + $0x7c4] ss:$24 sps:$4 sm:$0xff]  }
 0x180   : > { %2451 = vmatprep.subr.bf16.mxu0 %v4450_v37  ;;  %v4532_v37 = vld [vmem:[#allocation7 + $0x7c0] ss:$24 sps:$4 sm:$0xff]  }
 0x182   : > { %2366 = vmatpush1.bf16.msra.mxu1 %v4445_v38  ;;  %v4537_v38 = vld [vmem:[#allocation7 + $0x7f4] ss:$24 sps:$4 sm:$0xff]  }
 0x183   : > { %2452 = vmatpush1.bf16.msra.mxu0 %v4448_v39  ;;  %2367 = vmatprep.subr.bf16.mxu1 %v4453_v40  ;;  %v4535_v39 = vld [vmem:[#allocation7 + $0x7f0] ss:$24 sps:$4 sm:$0xff]   ;;  %v4540_v40 = vld [vmem:[#allocation7 + $0x824] ss:$24 sps:$4 sm:$0xff]  }
 0x184   : > { %2453 = vmatprep.subr.bf16.mxu0 %v4456_v41  ;;  %v4538_v41 = vld [vmem:[#allocation7 + $0x820] ss:$24 sps:$4 sm:$0xff]  }
 0x186   : > { %2368 = vmatpush1.bf16.msra.mxu1 %v4451_v42  ;;  %v4543_v42 = vld [vmem:[#allocation7 + $0x854] ss:$24 sps:$4 sm:$0xff]  }
 0x187   : > { %2454 = vmatpush1.bf16.msra.mxu0 %v4454_v43  ;;  %2369 = vmatprep.subr.bf16.mxu1 %v4459_v44  ;;  %v4541_v43 = vld [vmem:[#allocation7 + $0x850] ss:$24 sps:$4 sm:$0xff]   ;;  %v4546_v44 = vld [vmem:[#allocation7 + $0x884] ss:$24 sps:$4 sm:$0xff]  }
 0x188   : > { %2455 = vmatprep.subr.bf16.mxu0 %v4462_v45  ;;  %v4544_v45 = vld [vmem:[#allocation7 + $0x880] ss:$24 sps:$4 sm:$0xff]  }
 0x18a   : > { %2370 = vmatpush1.bf16.msra.mxu1 %v4457_v46  ;;  %v4549_v46 = vld [vmem:[#allocation7 + $0x8b4] ss:$24 sps:$4 sm:$0xff]  }
 0x18b   : > { %2456 = vmatpush1.bf16.msra.mxu0 %v4460_v47  ;;  %2371 = vmatprep.subr.bf16.mxu1 %v4465_v50  ;;  %v4547_v47 = vld [vmem:[#allocation7 + $0x8b0] ss:$24 sps:$4 sm:$0xff]   ;;  %v4552_v50 = vld [vmem:[#allocation7 + $0x8e4] ss:$24 sps:$4 sm:$0xff]  }
 0x18c   : > { %2457 = vmatprep.subr.bf16.mxu0 %v4468_v51  ;;  %v4550_v51 = vld [vmem:[#allocation7 + $0x8e0] ss:$24 sps:$4 sm:$0xff]  }
 0x18e   : > { %2372 = vmatpush1.bf16.msra.mxu1 %v4463_v52 }
 0x18f   : > { %2458 = vmatpush1.bf16.msra.mxu0 %v4466_v53  ;;  %2373 = vmatprep.subr.bf16.mxu1 %v4471_v54 }
 0x190   : > { %2459 = vmatprep.subr.bf16.mxu0 %v4474_v55 }
 0x192   : > { %2374 = vmatpush1.bf16.msra.mxu1 %v4469_v56 }
 0x193   : > { %2460 = vmatpush1.bf16.msra.mxu0 %v4472_v57  ;;  %2375 = vmatprep.subr.bf16.mxu1 %v4477_v58 }
 0x194   : > { %2461 = vmatprep.subr.bf16.mxu0 %v4480_v59 }
 0x196   : > { %2376 = vmatpush1.bf16.msra.mxu1 %v4475_v60 }
 0x197   : > { %2462 = vmatpush1.bf16.msra.mxu0 %v4478_v61  ;;  %2377 = vmatprep.subr.bf16.mxu1 %v4483_v62 }
 0x198   : > { %2463 = vmatprep.subr.bf16.mxu0 %v4486_v63 }
 0x19a   : > { %2378 = vmatpush1.bf16.msra.mxu1 %v4481_v0 }
 0x19b   : > { %2464 = vmatpush1.bf16.msra.mxu0 %v4484_v1  ;;  %2379 = vmatprep.subr.bf16.mxu1 %v4489_v2 }
 0x19c   : > { %2465 = vmatprep.subr.bf16.mxu0 %v4492_v3 }
 0x19e   : > { %2380 = vmatpush1.bf16.msra.mxu1 %v4487_v4 }
 0x19f   : > { %2466 = vmatpush1.bf16.msra.mxu0 %v4490_v5  ;;  %2381 = vmatprep.subr.bf16.mxu1 %v4495_v8 }
 0x1a0   : > { %2467 = vmatprep.subr.bf16.mxu0 %v4498_v9 }
 0x1a2   : > { %2382 = vmatpush1.bf16.msra.mxu1 %v4493_v10 }
 0x1a3   : > { %2468 = vmatpush1.bf16.msra.mxu0 %v4496_v12  ;;  %2383 = vmatprep.subr.bf16.mxu1 %v4501_v13 }
 0x1a4   : > { %2469 = vmatprep.subr.bf16.mxu0 %v4504_v14 }
 0x1a6   : > { %2384 = vmatpush1.bf16.msra.mxu1 %v4499_v15 }
 0x1a7   : > { %2470 = vmatpush1.bf16.msra.mxu0 %v4502_v16 }
 0x1a8   : > { %2482 = vmatprep.subr.bf16.mxu0 %v4507_v17 }
 0x1a9   : > { %2386 = vmatmul.mubr.bf16.vlgmr.msra.gmra.mrb[4].mxu1 %v5097_v11 }
 0x1aa   : > { %2472 = vmatmul.mubr.bf16.vlgmr.msra.gmra.mrb[4].mxu0 %v4554_v20 }
 0x1ab   : > { %2483 = vmatpush1.bf16.msra.mxu0 %v4505_v18  ;;  %2514 = vmatprep.mubr.bf16.mxu0 %v5094_v34 }
 0x1ac   : > { %2484 = vmatprep.subr.bf16.mxu0 %v4510_v19 }
 0x1af   : > { %2485 = vmatpush1.bf16.msra.mxu0 %v4508_v21 }
 0x1b0   : > { %2486 = vmatprep.subr.bf16.mxu0 %v4513_v22 }
 0x1b3   : > { %2487 = vmatpush1.bf16.msra.mxu0 %v4511_v23 }
 0x1b4   : > { %2488 = vmatprep.subr.bf16.mxu0 %v4516_v24 }
 0x1b7   : > { %2489 = vmatpush1.bf16.msra.mxu0 %v4514_v25 }
 0x1b8   : > { %2490 = vmatprep.subr.bf16.mxu0 %v4519_v26 }
 0x1bb   : > { %2491 = vmatpush1.bf16.msra.mxu0 %v4517_v7 }
 0x1bc   : > { %2492 = vmatprep.subr.bf16.mxu0 %v4522_v6  ;;  %v2172_v49 = vpop.f32.mrb[0].mxu1 }
 0x1bd   : > { %v2174_v34 = vpop.f32.mrb[1].mxu1 }
 0x1be   : > { %v2176_v29 = vpop.f32.mrb[2].mxu1 }
 0x1bf   : > { %2493 = vmatpush1.bf16.msra.mxu0 %v4520_v27  ;;  %v2178_v31 = vpop.f32.mrb[3].mxu1 }
 0x1c0   : > { %2494 = vmatprep.subr.bf16.mxu0 %v4525_v28 }
 0x1c3   : > { %2495 = vmatpush1.bf16.msra.mxu0 %v4523_v48 }
 0x1c4   : > { %2496 = vmatprep.subr.bf16.mxu0 %v4528_v30 }
 0x1c7   : > { %2497 = vmatpush1.bf16.msra.mxu0 %v4526_v32 }
 0x1c8   : > { %2498 = vmatprep.subr.bf16.mxu0 %v4531_v33 }
 0x1cb   : > { %2499 = vmatpush1.bf16.msra.mxu0 %v4529_v35 }
 0x1cc   : > { %2500 = vmatprep.subr.bf16.mxu0 %v4534_v36 }
 0x1cf   : > { %2501 = vmatpush1.bf16.msra.mxu0 %v4532_v37 }
 0x1d0   : > { %2502 = vmatprep.subr.bf16.mxu0 %v4537_v38 }
 0x1d3   : > { %2503 = vmatpush1.bf16.msra.mxu0 %v4535_v39 }
 0x1d4   : > { %2504 = vmatprep.subr.bf16.mxu0 %v4540_v40 }
 0x1d7   : > { %2505 = vmatpush1.bf16.msra.mxu0 %v4538_v41 }
 0x1d8   : > { %2506 = vmatprep.subr.bf16.mxu0 %v4543_v42 }
 0x1db   : > { %2507 = vmatpush1.bf16.msra.mxu0 %v4541_v43 }
 0x1dc   : > { %2508 = vmatprep.subr.bf16.mxu0 %v4546_v44 }
 0x1df   : > { %2509 = vmatpush1.bf16.msra.mxu0 %v4544_v45 }
 0x1e0   : > { %2510 = vmatprep.subr.bf16.mxu0 %v4549_v46 }
 0x1e3   : > { %2511 = vmatpush1.bf16.msra.mxu0 %v4547_v47 }
 0x1e4   : > { %2512 = vmatprep.subr.bf16.mxu0 %v4552_v50 }
 0x1e7   : > { %2513 = vmatpush1.bf16.msra.mxu0 %v4550_v51  ;;  %v4854_v51 = vmov 1966171168  }
 0x1ea   : > { %2515 = vmatmul.mubr.bf16.vlgmr.msra.gmra.mrb[4].mxu0 %v5097_v11 }
 0x1fd   : > { %v2258_v52 = vpop.f32.mrb[0].mxu0 }
 0x1fe   : > { %v3981_v53 = vadd.f32 %v2258_v52, %v2172_v49  ;;  %v2260_v54 = vpop.f32.mrb[1].mxu0  ;;  %v2593_v52 = vunpack.c.l.s4 %v4854_v51 }
 0x1ff   : > { %v3982_v55 = vadd.f32 %v2260_v54, %v2174_v34  ;;  %v2262_v56 = vpop.f32.mrb[2].mxu0 }
 0x200   : > { %v3983_v57 = vadd.f32 %v2262_v56, %v2176_v29  ;;  %v2264_v58 = vpop.f32.mrb[3].mxu0  ;;  %v2638_v60 = vmul.f32 %v3981_v53, %v3981_v53  ;;  %v4853_v29 = vmov 0.0  }
 0x201   : > { %v3984_v59 = vadd.f32 %v2264_v58, %v2178_v31  ;;  %v2639_v0 = vmul.f32 %v3982_v55, %v3982_v55  ;;  %372 = vst [vmem:[#allocation3] sm:$0xff] %v4853_v29  ;;  %373 = vst [vmem:[#allocation3 + $0x8] sm:$0xf] %v4853_v29 }
 0x202   : > { %v2525_v61 = vpack.c.bf16 %v3983_v57, %v3981_v53  ;;  %v2541_v62 = vadd.f32 %v3983_v57, %v3981_v53  ;;  %v2644_v63 = vmul.f32 %v3983_v57, %v3983_v57  ;;  %v2595_v53 = vlaneseq }
 0x203   : > { %v2526_v1 = vpack.c.bf16 %v3984_v59, %v3982_v55  ;;  %v2548_v2 = vadd.f32 %v3984_v59, %v3982_v55  ;;  %v2645_v3 = vmul.f32 %v3984_v59, %v3984_v59 }
 0x204   : > { %2534 = vst [vmem:[#allocation2] sm:$0xff] %v2525_v61  ;;  %v2542_v4 = vrot.slane %v2541_v62, 4  ;;  %v2650_v5 = vadd.f32 %v2644_v63, %v2638_v60  ;;  %v2596_v63 = vshrl.u32 %v2595_v53, 7  ;;  %vm2633_vm0 = vcmp.lt.s32.totalorder %v2595_v53, 768 }
 0x205   : > { %2535 = vst [vmem:[#allocation2 + $0x8] sm:$0xff] %v2526_v1  ;;  %v2549_v11 = vrot.slane %v2548_v2, 4  ;;  %v2657_v8 = vadd.f32 %v2645_v3, %v2639_v0 }
 0x206   : > { %v2543_v9 = vadd.f32 %v2542_v4, %v2541_v62  ;;  %v2651_v10 = vrot.slane %v2650_v5, 4  ;;  %v2594_v62 = vunpack.c.0.s8 %v2593_v52 }
 0x207   : > { %v2550_v12 = vadd.f32 %v2549_v11, %v2548_v2  ;;  %v2658_v13 = vrot.slane %v2657_v8, 4 }
 0x208   : > { %v2544_v14 = vrot.slane %v2543_v9, 2  ;;  %v2652_v15 = vadd.f32 %v2651_v10, %v2650_v5 }
 0x209   : > { %v2551_v16 = vrot.slane %v2550_v12, 2  ;;  %v2659_v17 = vadd.f32 %v2658_v13, %v2657_v8 }
 0x20a   : > { %v2545_v18 = vadd.f32 %v2544_v14, %v2543_v9  ;;  %v2653_v19 = vrot.slane %v2652_v15, 2  ;;  %v5110_v9 = vsub.s32 %v2594_v62, %v2596_v63 }
 0x20b   : > { %v2552_v20 = vadd.f32 %v2551_v16, %v2550_v12  ;;  %v2660_v21 = vrot.slane %v2659_v17, 2 }
 0x20c   : > { %v2546_v22 = vrot.slane %v2545_v18, 1  ;;  %v2654_v23 = vadd.f32 %v2653_v19, %v2652_v15 }
 0x20d   : > { %v2553_v24 = vrot.slane %v2552_v20, 1  ;;  %v2661_v25 = vadd.f32 %v2660_v21, %v2659_v17 }
 0x20e   : > { %v2547_v26 = vadd.f32 %v2546_v22, %v2545_v18  ;;  %v2655_v7 = vrot.slane %v2654_v23, 1 }
 0x20f   : > { %v2554_v6 = vadd.f32 %v2553_v24, %v2552_v20  ;;  %v2662_v27 = vrot.slane %v2661_v25, 1 }
 0x210   : > { %v2656_v28 = vadd.f32 %v2655_v7, %v2654_v23 }
 0x211   : > { %v2589_v49 = vcombine.low %v2547_v26, %v2554_v6  ;;  %v2663_v34 = vadd.f32 %v2662_v27, %v2661_v25 }
 0x213   : > { %v2698_v48 = vcombine.low %v2656_v28, %v2663_v34  ;;  %v2598_v16 = vrot.slane %v2589_v49, %v5110_v9 }
 0x215   : > { %v2707_v19 = vrot.slane %v2698_v48, %v5110_v9 }
 0x27c   : > { %v2387_v30 = vpop.f32.mrb[4].mxu1 }
 0x27d   : > { %v2389_v31 = vpop.f32.mrb[5].mxu1  ;;  %v2640_v33 = vmul.f32 %v2387_v30, %v2387_v30 }
 0x27e   : > { %v2391_v32 = vpop.f32.mrb[6].mxu1  ;;  %v2641_v39 = vmul.f32 %v2389_v31, %v2389_v31 }
 0x27f   : > { %v2527_v35 = vpack.c.bf16 %v2391_v32, %v2387_v30  ;;  %v2555_v36 = vadd.f32 %v2391_v32, %v2387_v30  ;;  %v2646_v37 = vmul.f32 %v2391_v32, %v2391_v32  ;;  %v2393_v38 = vpop.f32.mrb[7].mxu1 }
 0x280   : > { %v2528_v40 = vpack.c.bf16 %v2393_v38, %v2389_v31  ;;  %v2562_v41 = vadd.f32 %v2393_v38, %v2389_v31  ;;  %v2647_v42 = vmul.f32 %v2393_v38, %v2393_v38 }
 0x281   : > { %2536 = vst [vmem:[#allocation2 + $0x10] sm:$0xff] %v2527_v35  ;;  %v2556_v43 = vrot.slane %v2555_v36, 4  ;;  %v2664_v44 = vadd.f32 %v2646_v37, %v2640_v33 }
 0x282   : > { %2537 = vst [vmem:[#allocation2 + $0x18] sm:$0xff] %v2528_v40  ;;  %v2563_v45 = vrot.slane %v2562_v41, 4  ;;  %v2671_v46 = vadd.f32 %v2647_v42, %v2641_v39 }
 0x283   : > { %v2557_v47 = vadd.f32 %v2556_v43, %v2555_v36  ;;  %v2665_v50 = vrot.slane %v2664_v44, 4 }
 0x284   : > { %v2564_v54 = vadd.f32 %v2563_v45, %v2562_v41  ;;  %v2672_v55 = vrot.slane %v2671_v46, 4 }
 0x285   : > { %v2558_v56 = vrot.slane %v2557_v47, 2  ;;  %v2666_v57 = vadd.f32 %v2665_v50, %v2664_v44 }
 0x286   : > { %v2565_v58 = vrot.slane %v2564_v54, 2  ;;  %v2673_v59 = vadd.f32 %v2672_v55, %v2671_v46 }
 0x287   : > { %v2559_v60 = vadd.f32 %v2558_v56, %v2557_v47  ;;  %v2667_v61 = vrot.slane %v2666_v57, 2 }
 0x288   : > { %v2566_v0 = vadd.f32 %v2565_v58, %v2564_v54  ;;  %v2674_v1 = vrot.slane %v2673_v59, 2 }
 0x289   : > { %v2560_v2 = vrot.slane %v2559_v60, 1  ;;  %v2668_v3 = vadd.f32 %v2667_v61, %v2666_v57 }
 0x28a   : > { %v2567_v4 = vrot.slane %v2566_v0, 1  ;;  %v2675_v5 = vadd.f32 %v2674_v1, %v2673_v59 }
 0x28b   : > { %v2561_v11 = vadd.f32 %v2560_v2, %v2559_v60  ;;  %v2669_v8 = vrot.slane %v2668_v3, 1  ;;  %v2540_v2 = vld [vmem:[#allocation3] ss:$2 sm:$0x3f] }
 0x28c   : > { %v2568_v10 = vadd.f32 %v2567_v4, %v2566_v0  ;;  %v2676_v12 = vrot.slane %v2675_v5, 1 }
 0x28d   : > { %v2670_v13 = vadd.f32 %v2669_v8, %v2668_v3 }
 0x28e   : > { %v2590_v14 = vcombine.low %v2561_v11, %v2568_v10  ;;  %v2677_v15 = vadd.f32 %v2676_v12, %v2675_v5  ;;  %v2637_v11 = vld [vmem:[#allocation3 + $0x1] ss:$2 sm:$0x3f] }
 0x290   : > { %v2605_v17 = vrot.slane %v2590_v14, %v5110_v9  ;;  %v2699_v18 = vcombine.low %v2670_v13, %v2677_v15 }
 0x292   : > { %v2613_v20 = vcombine.low %v2598_v16, %v2605_v17  ;;  %v2714_v21 = vrot.slane %v2699_v18, %v5110_v9 }
 0x294   : > { %v2722_v22 = vcombine.low %v2707_v19, %v2714_v21  ;;  %v2620_v63 = vrot.slane %v2613_v20, %v5110_v9 }
 0x296   : > { %v2729_v3 = vrot.slane %v2722_v22, %v5110_v9 }
 0x2bd   : > { %v2516_v23 = vpop.f32.mrb[4].mxu0 }
 0x2be   : > { %v2518_v24 = vpop.f32.mrb[5].mxu0  ;;  %v2642_v26 = vmul.f32 %v2516_v23, %v2516_v23 }
 0x2bf   : > { %v2520_v25 = vpop.f32.mrb[6].mxu0  ;;  %v2643_v34 = vmul.f32 %v2518_v24, %v2518_v24 }
 0x2c0   : > { %v2529_v7 = vpack.c.bf16 %v2520_v25, %v2516_v23  ;;  %v2569_v6 = vadd.f32 %v2520_v25, %v2516_v23  ;;  %v2648_v27 = vmul.f32 %v2520_v25, %v2520_v25  ;;  %v2522_v28 = vpop.f32.mrb[7].mxu0 }
 0x2c1   : > { %v2530_v29 = vpack.c.bf16 %v2522_v28, %v2518_v24  ;;  %v2576_v49 = vadd.f32 %v2522_v28, %v2518_v24  ;;  %v2649_v30 = vmul.f32 %v2522_v28, %v2522_v28 }
 0x2c2   : > { %2538 = vst [vmem:[#allocation2 + $0x20] sm:$0xff] %v2529_v7  ;;  %v2570_v31 = vrot.slane %v2569_v6, 4  ;;  %v2678_v32 = vadd.f32 %v2648_v27, %v2642_v26 }
 0x2c3   : > { %2539 = vst [vmem:[#allocation2 + $0x28] sm:$0xff] %v2530_v29  ;;  %v2577_v48 = vrot.slane %v2576_v49, 4  ;;  %v2685_v33 = vadd.f32 %v2649_v30, %v2643_v34 }
 0x2c4   : > { %v2571_v35 = vadd.f32 %v2570_v31, %v2569_v6  ;;  %v2679_v36 = vrot.slane %v2678_v32, 4 }
 0x2c5   : > { %v2578_v37 = vadd.f32 %v2577_v48, %v2576_v49  ;;  %v2686_v38 = vrot.slane %v2685_v33, 4 }
 0x2c6   : > { %v2572_v39 = vrot.slane %v2571_v35, 2  ;;  %v2680_v40 = vadd.f32 %v2679_v36, %v2678_v32 }
 0x2c7   : > { %v2579_v41 = vrot.slane %v2578_v37, 2  ;;  %v2687_v42 = vadd.f32 %v2686_v38, %v2685_v33 }
 0x2c8   : > { %v2573_v43 = vadd.f32 %v2572_v39, %v2571_v35  ;;  %v2681_v44 = vrot.slane %v2680_v40, 2 }
 0x2c9   : > { %v2580_v45 = vadd.f32 %v2579_v41, %v2578_v37  ;;  %v2688_v46 = vrot.slane %v2687_v42, 2 }
 0x2ca   : > { %v2574_v47 = vrot.slane %v2573_v43, 1  ;;  %v2682_v50 = vadd.f32 %v2681_v44, %v2680_v40 }
 0x2cb   : > { %v2581_v51 = vrot.slane %v2580_v45, 1  ;;  %v2689_v52 = vadd.f32 %v2688_v46, %v2687_v42 }
 0x2cc   : > { %v2575_v54 = vadd.f32 %v2574_v47, %v2573_v43  ;;  %v2683_v55 = vrot.slane %v2682_v50, 1 }
 0x2cd   : > { %v2582_v56 = vadd.f32 %v2581_v51, %v2580_v45  ;;  %v2690_v57 = vrot.slane %v2689_v52, 1 }
 0x2ce   : > { %v2684_v58 = vadd.f32 %v2683_v55, %v2682_v50 }
 0x2cf   : > { %v2591_v59 = vcombine.low %v2575_v54, %v2582_v56  ;;  %v2691_v60 = vadd.f32 %v2690_v57, %v2689_v52 }
 0x2d1   : > { %v2612_v61 = vrot.slane %v2591_v59, %v5110_v9  ;;  %v2700_v62 = vcombine.low %v2684_v58, %v2691_v60 }
 0x2d3   : > { %v2627_v0 = vrot.slane %v2612_v61, %v5110_v9  ;;  %v2721_v1 = vrot.slane %v2700_v62, %v5110_v9 }
 0x2d5   : > { %v2628_v4 = vcombine.low %v2620_v63, %v2627_v0  ;;  %v2736_v5 = vrot.slane %v2721_v1, %v5110_v9 }
 0x2d7   : > { %v2630_v8 = vadd.f32 %v2628_v4, %v2540_v2  ;;  %v2737_v10 = vcombine.low %v2729_v3, %v2736_v5 }
 0x2d9   : > { %2635 = vst.msk [vmem:[#allocation3] ss:$2 sm:$0x3f] %vm2633_vm0, %v2630_v8  ;;  %v2739_v12 = vadd.f32 %v2737_v10, %v2637_v11 }
 0x2db   : > { %2740 = vst.msk [vmem:[#allocation3 + $0x1] ss:$2 sm:$0x3f] %vm2633_vm0, %v2739_v12 }
 0x2dc PF: > { %p3861_p4 = scmp.ne.s32.totalorder %s4833_s21, 1 }
 0x2dd   : > { %v4555_v13 = vld [vmem:[#allocation12 + $0x40] sm:$0xff] (!%p3861_p4)   ;;  %v4558_v16 = vld [vmem:[#allocation12 + $0x48] sm:$0xff] (!%p3861_p4)   ;;  %v4562_v18 = vld [vmem:[#allocation12 + $0x50] sm:$0xff] (!%p3861_p4)   ;;  %v2782_v50 = vlaneseq (!%p3861_p4) }
 0x2de   : > { %2744 = sbr.rel (%p3861_p4) target bundleno = 1033 (0x409), region = 80  ;;  %v4556_v14 = vld [vmem:[#allocation12] sm:$0xff] (!%p3861_p4)   ;;  %3915 = vmatprep.subr.bf16.mxu0 (!%p3861_p4), %v4555_v13  ;;  %v4560_v53 = vld [vmem:[#allocation12 + $0x8] sm:$0xff] (!%p3861_p4)   ;;  %v4564_v20 = vld [vmem:[#allocation12 + $0x10] sm:$0xff] (!%p3861_p4)  }
 0x2df   : > { %v4557_v15 = vld [vmem:[#allocation12 + $0xc0] sm:$0xff] (!%p3861_p4)   ;;  %3916 = vmatpush3.bf16.msra.mxu0 (!%p3861_p4), %v4556_v14  ;;  %v4561_v17 = vld [vmem:[#allocation12 + $0xc8] sm:$0xff] (!%p3861_p4)   ;;  %v4565_v21 = vld [vmem:[#allocation12 + $0xd0] sm:$0xff] (!%p3861_p4)   ;;  %v5124_v51 = vshrl.u32 (!%p3861_p4), %v2782_v50, 7 }
 0x2e0   : > { %3937 = vmatprep.subr.bf16.mxu1 (!%p3861_p4), %v4557_v15  ;;  %v4559_v9 = vld [vmem:[#allocation12 + $0x80] sm:$0xff] (!%p3861_p4)   ;;  %3917 = vmatprep.subr.bf16.mxu0 (!%p3861_p4), %v4558_v16  ;;  %v4563_v19 = vld [vmem:[#allocation12 + $0x88] sm:$0xff] (!%p3861_p4)   ;;  %v4566_v22 = vld [vmem:[#allocation12 + $0x58] sm:$0xff] (!%p3861_p4)  }
 0x2e1   : > { %3938 = vmatpush3.bf16.msra.mxu1 (!%p3861_p4), %v4559_v9  ;;  %v4567_v23 = vld [vmem:[#allocation12 + $0x90] sm:$0xff] (!%p3861_p4)   ;;  %v4568_v24 = vld [vmem:[#allocation12 + $0x18] sm:$0xff] (!%p3861_p4)   ;;  %v4570_v26 = vld [vmem:[#allocation12 + $0x60] sm:$0xff] (!%p3861_p4)   ;;  %v2788_v56 = vsub.s32 (!%p3861_p4), 1, %v5124_v51  ;;  %v2784_v57 = vsub.s32 (!%p3861_p4), 0, %v5124_v51  ;;  %v2796_v59 = vsub.s32 (!%p3861_p4), 3, %v5124_v51 }
 0x2e2   : > { %3939 = vmatprep.subr.bf16.mxu1 (!%p3861_p4), %v4561_v17  ;;  %v4569_v25 = vld [vmem:[#allocation12 + $0xd8] sm:$0xff] (!%p3861_p4)   ;;  %v4572_v6 = vld [vmem:[#allocation12 + $0x20] sm:$0xff] (!%p3861_p4)   ;;  %v4574_v28 = vld [vmem:[#allocation12 + $0x68] sm:$0xff] (!%p3861_p4)   ;;  %v2792_v63 = vsub.s32 (!%p3861_p4), 2, %v5124_v51  ;;  %v2804_v0 = vsub.s32 (!%p3861_p4), 5, %v5124_v51 }
 0x2e3   : > { %3918 = vmatpush3.bf16.msra.mxu0 (!%p3861_p4), %v4560_v53  ;;  %v4571_v7 = vld [vmem:[#allocation12 + $0x98] sm:$0xff] (!%p3861_p4)   ;;  %v4573_v27 = vld [vmem:[#allocation12 + $0xe0] sm:$0xff] (!%p3861_p4)   ;;  %v4576_v29 = vld [vmem:[#allocation12 + $0x28] sm:$0xff] (!%p3861_p4)  }
 0x2e4   : > { %3919 = vmatprep.subr.bf16.mxu0 (!%p3861_p4), %v4562_v18  ;;  %v4575_v34 = vld [vmem:[#allocation12 + $0xa0] sm:$0xff] (!%p3861_p4)   ;;  %v4577_v49 = vld [vmem:[#allocation12 + $0xe8] sm:$0xff] (!%p3861_p4)   ;;  %v4578_v30 = vld [vmem:[#allocation12 + $0x70] sm:$0xff] (!%p3861_p4)  }
 0x2e5   : > { %3940 = vmatpush3.bf16.msra.mxu1 %v4563_v19  ;;  %v4579_v31 = vld [vmem:[#allocation12 + $0xa8] sm:$0xff]   ;;  %v4580_v32 = vld [vmem:[#allocation12 + $0x30] sm:$0xff]   ;;  %v4582_v33 = vld [vmem:[#allocation12 + $0x78] sm:$0xff]  }
 0x2e6   : > { %3941 = vmatprep.subr.bf16.mxu1 %v4565_v21  ;;  %v4581_v48 = vld [vmem:[#allocation12 + $0xf0] sm:$0xff]   ;;  %v4584_v36 = vld [vmem:[#allocation12 + $0x38] sm:$0xff]   ;;  %v4587_v44 = vld [vmem:[#allocation12 + $0x140] sm:$0xff]  }
 0x2e7   : > { %3920 = vmatpush3.bf16.msra.mxu0 %v4564_v20  ;;  %v4583_v35 = vld [vmem:[#allocation12 + $0xb0] sm:$0xff]   ;;  %v4585_v37 = vld [vmem:[#allocation12 + $0xf8] sm:$0xff]   ;;  %v2764_v54 = vld [vmem:[#allocation2 + $0x8] sm:$0xff] }
 0x2e8   : > { %3921 = vmatprep.subr.bf16.mxu0 %v4566_v22  ;;  %v2745_v38 = vld [vmem:[#allocation3] ss:$2 sm:$0x3f]  ;;  %v2748_v39 = vld [vmem:[#allocation3 + $0x1] ss:$2 sm:$0x3f]  ;;  %v2770_v62 = vunpack.c.l.bf16 %v2764_v54  ;;  %v2776_v2 = vunpack.c.h.bf16 %v2764_v54 }
 0x2e9   : > { %3942 = vmatpush3.bf16.msra.mxu1 %v4567_v23  ;;  %v2746_v40 = vmul.f32 0.5, %v2745_v38  ;;  %v2749_v41 = vmul.f32 0.5, %v2748_v39  ;;  %v4586_v43 = vld [vmem:[#allocation12 + $0xb8] sm:$0xff]   ;;  %v2766_v58 = vld [vmem:[#allocation2 + $0x18] sm:$0xff]  ;;  %v2765_v60 = vld [vmem:[#allocation2 + $0x10] sm:$0xff] }
 0x2ea   : > { %3943 = vmatprep.subr.bf16.mxu1 %v4569_v25  ;;  %v2753_v52 = vld [vmem:[#allocation9] sm:$0x3f]  ;;  %v2768_v5 = vld [vmem:[#allocation2 + $0x28] sm:$0xff]  ;;  %v2757_v11 = vld [vmem:[#allocation10] sm:$0x3f]  ;;  %v2772_v8 = vunpack.c.l.bf16 %v2766_v58  ;;  %v2778_v10 = vunpack.c.h.bf16 %v2766_v58  ;;  %v2771_v12 = vunpack.c.l.bf16 %v2765_v60  ;;  %v2777_v13 = vunpack.c.h.bf16 %v2765_v60 }
 0x2eb   : > { %3922 = vmatpush3.bf16.msra.mxu0 %v4568_v24  ;;  %v2750_v42 = vmul.f32 %v2746_v40, %v2746_v40  ;;  %v2763_v55 = vld [vmem:[#allocation2] sm:$0xff]  ;;  %v2774_v17 = vunpack.c.l.bf16 %v2768_v5  ;;  %v2780_v18 = vunpack.c.h.bf16 %v2768_v5  ;;  %v4588_v54 = vld [vmem:[#allocation12 + $0x100] sm:$0xff]  }
 0x2ec   : > { %3923 = vmatprep.subr.bf16.mxu0 %v4570_v26  ;;  %v2769_v3 = vunpack.c.l.bf16 %v2763_v55  ;;  %v2775_v4 = vunpack.c.h.bf16 %v2763_v55  ;;  %v4594_v5 = vld [vmem:[#allocation12 + $0x118] sm:$0xff]  }
 0x2ed   : > { %3944 = vmatpush3.bf16.msra.mxu1 %v4571_v7  ;;  %v2751_v45 = vsub.f32 %v2749_v41, %v2750_v42 }
 0x2ee   : > { %3945 = vmatprep.subr.bf16.mxu1 %v4573_v27 }
 0x2ef   : > { %3924 = vmatpush3.bf16.msra.mxu0 %v4572_v6  ;;  %v2752_v46 = vmax.f32 %v2751_v45, 0.0 }
 0x2f0   : > { %3925 = vmatprep.subr.bf16.mxu0 %v4574_v28 }
 0x2f1   : > { %3946 = vmatpush3.bf16.msra.mxu1 %v4575_v34  ;;  %v2754_v47 = vadd.f32 1e-05, %v2752_v46 }
 0x2f2   : > { %3947 = vmatprep.subr.bf16.mxu1 %v4577_v49 }
 0x2f3   : > { %3926 = vmatpush3.bf16.msra.mxu0 %v4576_v29  ;;  %4603 = vrsqrt.f32 %v2754_v47 }
 0x2f4   : > { %3927 = vmatprep.subr.bf16.mxu0 %v4578_v30 }
 0x2f5   : > { %3948 = vmatpush3.bf16.msra.mxu1 %v4579_v31 }
 0x2f6   : > { %3949 = vmatprep.subr.bf16.mxu1 %v4581_v48 }
 0x2f7   : > { %3928 = vmatpush3.bf16.msra.mxu0 %v4580_v32 }
 0x2f8   : > { %3929 = vmatprep.subr.bf16.mxu0 %v4582_v33 }
 0x2f9   : > { %3950 = vmatpush3.bf16.msra.mxu1 %v4583_v35 }
 0x2fa   : > { %3951 = vmatprep.subr.bf16.mxu1 %v4585_v37 }
 0x2fb   : > { %3930 = vmatpush3.bf16.msra.mxu0 %v4584_v36 }
 0x2fc   : > { %3959 = vmatprep.subr.bf16.mxu0 %v4587_v44 }
 0x2fd   : > { %3952 = vmatpush3.bf16.msra.mxu1 %v4586_v43  ;;  %v4604_v61 = vpop.eup %4603 }
 0x2fe   : > { %v5131_v1 = vmul.f32 %v4604_v61, %v2753_v52 }
 0x300   : > { %v2758_v14 = vmul.f32 %v5131_v1, %v2746_v40  ;;  %v2789_v15 = vrot.slane %v5131_v1, %v2788_v56  ;;  %v2785_v16 = vrot.slane %v5131_v1, %v2784_v57  ;;  %v2797_v9 = vrot.slane %v5131_v1, %v2796_v59 }
 0x301   : > { %v2793_v53 = vrot.slane %v5131_v1, %v2792_v63  ;;  %v2805_v19 = vrot.slane %v5131_v1, %v2804_v0 }
 0x302   : > { %v5139_v20 = vsub.f32 %v2757_v11, %v2758_v14  ;;  %v2813_v21 = vmul.f32 %v2789_v15, %v2770_v62  ;;  %v2819_v22 = vmul.f32 %v2789_v15, %v2776_v2  ;;  %v2812_v23 = vmul.f32 %v2785_v16, %v2769_v3  ;;  %v4590_v62 = vld [vmem:[#allocation12 + $0x108] sm:$0xff]   ;;  %v4592_v2 = vld [vmem:[#allocation12 + $0x110] sm:$0xff]   ;;  %v4593_v3 = vld [vmem:[#allocation12 + $0x158] sm:$0xff]  }
 0x303   : > { %v2818_v24 = vmul.f32 %v2785_v16, %v2775_v4  ;;  %v2815_v25 = vmul.f32 %v2797_v9, %v2772_v8  ;;  %v2821_v26 = vmul.f32 %v2797_v9, %v2778_v10  ;;  %v2814_v7 = vmul.f32 %v2793_v53, %v2771_v12  ;;  %v2767_v11 = vld [vmem:[#allocation2 + $0x20] sm:$0xff]  ;;  %v4595_v8 = vld [vmem:[#allocation12 + $0x160] sm:$0xff]   ;;  %v4597_v15 = vld [vmem:[#allocation12 + $0x168] sm:$0xff]  }
 0x304   : > { %v2832_v6 = vrot.slane %v5139_v20, %v2788_v56  ;;  %v2828_v27 = vrot.slane %v5139_v20, %v2784_v57  ;;  %v2840_v28 = vrot.slane %v5139_v20, %v2796_v59  ;;  %v2820_v34 = vmul.f32 %v2793_v53, %v2777_v13  ;;  %v4589_v59 = vld [vmem:[#allocation12 + $0x148] sm:$0xff]   ;;  %v4596_v14 = vld [vmem:[#allocation12 + $0x120] sm:$0xff]  }
 0x305   : > { %v2836_v29 = vrot.slane %v5139_v20, %v2792_v63  ;;  %v2817_v49 = vmul.f32 %v2805_v19, %v2774_v17  ;;  %v2823_v30 = vmul.f32 %v2805_v19, %v2780_v18  ;;  %v2848_v31 = vrot.slane %v5139_v20, %v2804_v0  ;;  %v4591_v0 = vld [vmem:[#allocation12 + $0x150] sm:$0xff]   ;;  %v4598_v17 = vld [vmem:[#allocation12 + $0x128] sm:$0xff]  }
 0x306   : > { %v2856_v32 = vadd.f32 %v2832_v6, %v2813_v21  ;;  %v2862_v48 = vadd.f32 %v2832_v6, %v2819_v22  ;;  %v2855_v33 = vadd.f32 %v2828_v27, %v2812_v23  ;;  %v2861_v35 = vadd.f32 %v2828_v27, %v2818_v24  ;;  %v4600_v21 = vld [vmem:[#allocation12 + $0x130] sm:$0xff]   ;;  %v4601_v22 = vld [vmem:[#allocation12 + $0x178] sm:$0xff]  }
 0x307   : > { %v2858_v36 = vadd.f32 %v2840_v28, %v2815_v25  ;;  %v2864_v37 = vadd.f32 %v2840_v28, %v2821_v26  ;;  %v2857_v38 = vadd.f32 %v2836_v29, %v2814_v7  ;;  %v2863_v39 = vadd.f32 %v2836_v29, %v2820_v34  ;;  %v4602_v24 = vld [vmem:[#allocation12 + $0x138] sm:$0xff]  }
 0x308   : > { %v2868_v40 = vmax.f32 %v2856_v32, 0.0  ;;  %v2874_v41 = vmax.f32 %v2862_v48, 0.0  ;;  %v2867_v42 = vmax.f32 %v2855_v33, 0.0  ;;  %v2873_v43 = vmax.f32 %v2861_v35, 0.0 }
 0x309   : > { %v2870_v44 = vmax.f32 %v2858_v36, 0.0  ;;  %v2876_v45 = vmax.f32 %v2864_v37, 0.0  ;;  %v2869_v46 = vmax.f32 %v2857_v38, 0.0  ;;  %v2875_v47 = vmax.f32 %v2863_v39, 0.0 }
 0x30a   : > { %v2880_v50 = vpack.c.bf16 %v2874_v41, %v2868_v40  ;;  %v2879_v52 = vpack.c.bf16 %v2873_v43, %v2867_v42  ;;  %v2860_v55 = vadd.f32 %v2848_v31, %v2817_v49  ;;  %v2866_v56 = vadd.f32 %v2848_v31, %v2823_v30 }
 0x30b   : > { %v2882_v57 = vpack.c.bf16 %v2876_v45, %v2870_v44  ;;  %v2881_v58 = vpack.c.bf16 %v2875_v47, %v2869_v46  ;;  %v2800_v4 = vsub.s32 4, %v5124_v51  ;;  %v2773_v10 = vunpack.c.l.bf16 %v2767_v11  ;;  %v4599_v51 = vld [vmem:[#allocation12 + $0x170] sm:$0xff]  }
 0x30c   : > { %3308 = vmatprep.mubr.bf16.mxu0 %v2880_v50  ;;  %v2872_v60 = vmax.f32 %v2860_v55, 0.0  ;;  %v2878_v61 = vmax.f32 %v2866_v56, 0.0  ;;  %v2779_v12 = vunpack.c.h.bf16 %v2767_v11 }
 0x30d   : > { %3309 = vmatmul.mubr.bf16.vlgmr.msra.gmra.mrb[0].mxu0 %v2879_v52  ;;  %3349 = vmatprep.mubr.bf16.mxu1 %v2882_v57  ;;  %v2801_v13 = vrot.slane %v5131_v1, %v2800_v4  ;;  %v2844_v53 = vrot.slane %v5139_v20, %v2800_v4  ;;  %v3862_v20 = vld [vmem:[#allocation13] ss:$0 sm:$0xff] }
 0x30e   : > { %3960 = vmatpush3.bf16.msra.mxu0 %v4588_v54  ;;  %3350 = vmatmul.mubr.bf16.vlgmr.msra.gmra.mrb[0].mxu1 %v2881_v58  ;;  %v2884_v63 = vpack.c.bf16 %v2878_v61, %v2872_v60 }
 0x30f   : > { %3961 = vmatprep.subr.bf16.mxu0 %v4589_v59  ;;  %v2816_v16 = vmul.f32 %v2801_v13, %v2773_v10  ;;  %v2822_v9 = vmul.f32 %v2801_v13, %v2779_v12 }
 0x310   : > { %3390 = vmatprep.mubr.bf16.mxu0 %v2884_v63 }
 0x311   : > { %v2859_v18 = vadd.f32 %v2844_v53, %v2816_v16  ;;  %v2865_v19 = vadd.f32 %v2844_v53, %v2822_v9 }
 0x312   : > { %3962 = vmatpush3.bf16.msra.mxu0 %v4590_v62 }
 0x313   : > { %3963 = vmatprep.subr.bf16.mxu0 %v4591_v0  ;;  %v2871_v23 = vmax.f32 %v2859_v18, 0.0  ;;  %v2877_v1 = vmax.f32 %v2865_v19, 0.0 }
 0x315   : > { %v2883_v25 = vpack.c.bf16 %v2877_v1, %v2871_v23 }
 0x316   : > { %3964 = vmatpush3.bf16.msra.mxu0 %v4592_v2 }
 0x317   : > { %3965 = vmatprep.subr.bf16.mxu0 %v4593_v3 }
 0x31a   : > { %3966 = vmatpush3.bf16.msra.mxu0 %v4594_v5 }
 0x31b   : > { %3967 = vmatprep.subr.bf16.mxu0 %v4595_v8 }
 0x31e   : > { %3968 = vmatpush3.bf16.msra.mxu0 %v4596_v14 }
 0x31f   : > { %3969 = vmatprep.subr.bf16.mxu0 %v4597_v15 }
 0x322   : > { %3970 = vmatpush3.bf16.msra.mxu0 %v4598_v17 }
 0x323   : > { %3971 = vmatprep.subr.bf16.mxu0 %v4599_v51 }
 0x326   : > { %3972 = vmatpush3.bf16.msra.mxu0 %v4600_v21 }
 0x327   : > { %3973 = vmatprep.subr.bf16.mxu0 %v4601_v22 }
 0x32a   : > { %3974 = vmatpush3.bf16.msra.mxu0 %v4602_v24 }
 0x32d   : > { %3391 = vmatmul.mubr.bf16.vlgmr.msra.gmra.mrb[4].mxu0 %v2883_v25 }
 0x3e0   : > { %v3931_v26 = vpop.f32.mrb[0].mxu0 }
 0x3e1   : > { %v3932_v7 = vpop.f32.mrb[1].mxu0  ;;  %v3953_v6 = vpop.f32.mrb[0].mxu1 }
 0x3e2   : > { %v3933_v27 = vadd.f32 %v3932_v7, %v3931_v26  ;;  %v3934_v28 = vpop.f32.mrb[2].mxu0  ;;  %v3954_v34 = vpop.f32.mrb[1].mxu1 }
 0x3e3   : > { %v3935_v29 = vpop.f32.mrb[3].mxu0  ;;  %v3955_v49 = vadd.f32 %v3954_v34, %v3953_v6  ;;  %v3956_v30 = vpop.f32.mrb[2].mxu1 }
 0x3e4   : > { %v3311_v31 = vadd.f32 %v3933_v27, %v3862_v20  ;;  %v3936_v32 = vadd.f32 %v3935_v29, %v3934_v28  ;;  %v3957_v48 = vpop.f32.mrb[3].mxu1 }
 0x3e5   : > { %v3958_v33 = vadd.f32 %v3957_v48, %v3956_v30 }
 0x3e6   : > { %v3314_v35 = vadd.f32 %v3936_v32, %v3862_v20  ;;  %v3352_v36 = vadd.f32 %v3955_v49, %v3311_v31 }
 0x3e8   : > { %v3355_v37 = vadd.f32 %v3958_v33, %v3314_v35 }
 0x400   : > { %v3975_v38 = vpop.f32.mrb[4].mxu0 }
 0x401   : > { %v3976_v39 = vpop.f32.mrb[5].mxu0 }
 0x402   : > { %v3977_v40 = vadd.f32 %v3976_v39, %v3975_v38  ;;  %v3978_v41 = vpop.f32.mrb[6].mxu0 }
 0x403   : > { %v3979_v42 = vpop.f32.mrb[7].mxu0 }
 0x404   : > { %v3393_v43 = vadd.f32 %v3977_v40, %v3352_v36  ;;  %v3980_v44 = vadd.f32 %v3979_v42, %v3978_v41 }
 0x406   : > { %3399 = vst [vmem:[#allocation15] sm:$0xff] %v3393_v43  ;;  %v3396_v45 = vadd.f32 %v3980_v44, %v3355_v37 }
 0x408   : > { %3400 = vst [vmem:[#allocation15 + $0x8] sm:$0xff] %v3396_v45 }
 0x409 PF: > { %s5206_s21 = sadd.s32 4294967295, %s4841_s23   ;;  %s4855_s28 = smov [#allocation15]  }
 0x40a   : > { %p5151_p10 = scmp.eq.s32.totalorder %s5206_s21, 1  ;;  %s3416_s19 = sshll.u32 %s4855_s28, 4  ;;  %s3417_s19 = int_to_ptr.vmem [resolvable:$true] %s3416_s19 }
 0x40b   : > { %s4773_s20 = scalar_lea.vmem %s3417_s19, 256  ;;  %s4779_s9 = scalar_lea.vmem %s3417_s19, 512 }
 0x40c   : > { %p4774_p11 = scmp.ne.s32.totalorder %s3417_s19, %s4773_s20  ;;  %p4780_p0 = scmp.lt.s32.totalorder %s3417_s19, %s3417_s19 }
 0x40d   : > { %p4781_p1 = scmp.lt.s32.totalorder %s4779_s9, %s4773_s20 }
 0x40e   : > { %p4775_p12 = pnand %p4774_p11, %p5151_p10 }
 0x40f   : > { %p4782_p2 = por %p4781_p1, %p4780_p0 }
 0x410   : > { %p4776_p13 = pneg %p4775_p12 }
 0x412   : > { %p4783_p5 = pnand %p4782_p2, %p4776_p13 }
 0x414   : > { %4786 = shalt.err (!%p4783_p5)
}
 0x415   : > { %s4787_s29 = scalar_lea.hbm %s5192_s6, 256 }
 0x416   : > { %p4788_p6 = scmp.ne.s32.totalorder %s5192_s6, %s4787_s29  ;;  %p4793_p7 = scmp.lt.u32.totalorder %s4787_s29, %s5192_s6 }
 0x418   : > { %p4789_p8 = pnand %p4788_p6, %p5151_p10 }
 0x41a   : > { %p4790_p3 = pneg %p4789_p8 }
 0x41c   : > { %p4795_p9 = pnand %p4793_p7, %p4790_p3 }
 0x41e   : > { %4798 = shalt.err (!%p4795_p9)
}
 0x41f   : > { %s4856_s13 = smov 128   ;;  %s4857_s14 = smov 8  }
 0x420   : > { %4030 = dma.vmem_to_hbm [thread:$0]  (%p5151_p10), %s3417_s19, 256, %s5192_s6, [#allocation6], %s4856_s13, %s4856_s13, %s4857_s14  }
 0x421 PF: > { %s5208_s17 = sadd.s32 4294967294, %s4841_s23   ;;  %p5209_p11 = scmp.ge.s32.totalorder %s4841_s23, 2 }
 0x422   : > { %p4072_p4 = scmp.eq.s32.totalorder %s5208_s17, 1 }
 0x424   : > { %p4054_p12 = pnand %p4072_p4, %p5209_p11 }
 0x426   : > { %4828 = dma.done.wait (!%p4054_p12), [#allocation6], 256  }
 0x427   : > { %4830 = vsyncadd (!%p4054_p12), [#allocation6], 4294967040  ;;  %s25_s23 = sadd.s32 1, %s4841_s23   ;;  %s5210_s21 = smov %s4837_s22 }
 0x428   : > { %p22_p13 = scmp.ge.s32.totalorder %s25_s23, 4   ;;  %s5211_s22 = smov %s5213_s26 }
 0x42a   :  { %24 = sbr.rel (!%p22_p13) target bundleno = 8 (0x8), region = 125 }
 0x431   :  { %3437 = vsyncpa [#allocation5], 1 }
 0x432   :  { %3439 = vsyncpa [#allocation5 + $0x1], 1 }
 0x433   :  { %3440 = vsyncpa [#allocation8], 1 }
 0x434   :  { %3441 = vsyncpa [#allocation11], 1 }
 0x435   :  { %3442 = vsyncpa [#allocation14], 1 }
 0x436   :  { %3443 = vsyncpa [#allocation6], 1 }
 0x437   :  { %3445 = vsyncpa [#allocation6 + $0x1], 1 }

</bundles_post_ra>
